<compile_context>
chip_gen: v7x
topology: tpu7x:2x2x1
jax: 0.10.0
libtpu: 0.0.40
codegen_flags: <defaults>
</compile_context>

<pallas_src>
import functools

import jax
import jax.numpy as jnp
import numpy as np
from jax.experimental import pallas as pl
from jax.experimental.pallas import tpu as pltpu


def _lstm_stack_seq_kernel(
    # ---- inputs (all resident: constant index_map, DMA'd once) ----
    x_ref,        # [T, E]     all timestep embeddings
    w_gx_ref,     # [E, 4H]    x -> gates (gate order i,f,o,g)
    w_rh_ref,     # [2H, 4H]   [prev_r ; prev_h] -> gates (fused)
    b_g_ref,      # [1, 4H]    fused gate bias (b_ih + b_hh)
    w_f_ref,      # [H, PF]    fused [w_ro | w_ro@W_proj]; cols [rnn|o|v|d|u|pad]
    b_f_ref,      # [1, PF]
    init_ref,     # [3, H]     rows: h0, c0, r0
    V_init_ref,   # [S, H]     initial stack contents (zero padded to S rows)
    s_init_ref,   # [1, S]     initial stack strengths (lane-major, zero padded)
    # ---- outputs (all resident, written back to HBM once) ----
    o_seq_ref,    # [T, H]
    state_ref,    # [3, H]     final (rnn_output, c, r)
    V_ref,        # [S, H]
    s_ref,        # [1, S]
    # ---- scratch ----
    gx_ref,       # VMEM [T, 4H]  precomputed x->gate contributions (+ bias)
    *,
    depth0,       # static: number of valid stack rows before step 0
):
    f32 = jnp.float32
    H = init_ref.shape[1]
    S = V_ref.shape[0]
    T = x_ref.shape[0]

    # ---------------- one-time setup (single grid point) ----------------
    V_ref[...] = V_init_ref[...]

    # Hoisted x->gates for ALL timesteps: one [T,E]@[E,4H] matmul (+ bias),
    # off the recurrence-serial chain.
    gx_ref[...] = (jnp.dot(x_ref[...], w_gx_ref[...], preferred_element_type=f32)
                   + b_g_ref[...])

    # Loop-invariant weight loads and index helpers (built once, not per step).
    w_rh = w_rh_ref[...]
    w_f = w_f_ref[...]
    b_f = b_f_ref[...]
    rows = jax.lax.broadcasted_iota(jnp.int32, (S, S), 0)
    cols = jax.lax.broadcasted_iota(jnp.int32, (S, S), 1)
    tail_mask = (rows > cols).astype(f32)          # tail_mask[j, i] = 1 iff j > i
    lane = jax.lax.broadcasted_iota(jnp.int32, (1, S), 1)

    h0 = init_ref[0:1, :]          # carried hidden = previous (projected) rnn_output
    c0 = init_ref[1:2, :]
    r0 = init_ref[2:3, :]
    s0 = s_init_ref[...]
    # Tail-sum of the initial strengths; afterwards shid is carried step-to-step.
    shid0 = jnp.dot(s0, tail_mask, preferred_element_type=f32)

    def step(t, carry):
        h, c, r, s_prev, shid_prev = carry
        write_idx = t + depth0

        # ---- LSTMCell gates: hoisted x part + ONE fused recurrent matmul ----
        gx = gx_ref[pl.ds(t, 1), :]                       # [1, 4H]
        rh = jnp.concatenate([r, h], axis=1)              # [1, 2H]
        gates = gx + jnp.dot(rh, w_rh, preferred_element_type=f32)
        ifo = jax.nn.sigmoid(gates[:, 0:3 * H])           # i | f | o contiguous
        g_g = jnp.tanh(gates[:, 3 * H:4 * H])
        c_new = ifo[:, H:2 * H] * c + ifo[:, 0:H] * g_g
        h_lstm = ifo[:, 2 * H:3 * H] * jnp.tanh(c_new)

        # ---- fused rnn_out + (o, v, d, u) projections: ONE matmul ----
        fused = jnp.dot(h_lstm, w_f, preferred_element_type=f32) + b_f
        rnn_output = fused[:, 0:H]
        o_t = fused[:, H:2 * H]
        v_t = fused[:, 2 * H:3 * H]
        d_t = fused[:, 3 * H:3 * H + 1]                   # [1, 1]
        u_t = fused[:, 3 * H + 1:3 * H + 2]               # [1, 1]

        # ---- differentiable stack: soft pop by u_t, soft push (v_t, d_t) ----
        # Lanes >= write_idx of s_prev are zero, so the padded formulation
        # reproduces the variable-length PyTorch semantics exactly (including
        # the empty-stack first step).
        s_pop = jnp.maximum(s_prev - jnp.maximum(u_t - shid_prev, 0.0), 0.0)
        s_new = jnp.where(lane == write_idx, d_t, s_pop)  # append d_t
        V_ref[pl.ds(write_idx, 1), :] = v_t               # append v_t (row store)

        shid_new = jnp.dot(s_new, tail_mask, preferred_element_type=f32)
        read_w = jnp.minimum(s_new, jnp.maximum(1.0 - shid_new, 0.0))  # [1, S]
        new_r = jnp.dot(read_w, V_ref[...], preferred_element_type=f32)

        o_seq_ref[pl.ds(t, 1), :] = o_t
        return (rnn_output, c_new, new_r, s_new, shid_new)

    h_f, c_f, r_f, s_f, _ = jax.lax.fori_loop(
        0, T, step, (h0, c0, r0, s0, shid0), unroll=min(T, 8))

    state_ref[0:1, :] = h_f        # next call's "h" is the projected rnn_output
    state_ref[1:2, :] = c_f
    state_ref[2:3, :] = r_f
    s_ref[...] = s_f


# --------------------------------------------------------------------------
# Parameter construction / one-time repacking (hoisted out of the step path).
# --------------------------------------------------------------------------
def init_params(key, E, H):
    """PyTorch-style uniform(-1/sqrt(H), 1/sqrt(H)) init, weights stored [in,out]."""
    k = 1.0 / np.sqrt(H)
    ks = jax.random.split(key, 14)
    u = lambda kk, shape: jax.random.uniform(kk, shape, jnp.float32, -k, k)
    return dict(
        w_ih=u(ks[0], (E + H, 4 * H)),  # = torch weight_ih.T ; gate order i,f,g,o
        w_hh=u(ks[1], (H, 4 * H)),      # = torch weight_hh.T
        b_ih=u(ks[2], (4 * H,)),
        b_hh=u(ks[3], (4 * H,)),
        w_ro=u(ks[4], (H, H)), b_ro=u(ks[5], (H,)),
        w_d=u(ks[6], (H, 1)),  b_d=u(ks[7], (1,)),
        w_u=u(ks[8], (H, 1)),  b_u=u(ks[9], (1,)),
        w_v=u(ks[10], (H, H)), b_v=u(ks[11], (H,)),
        w_o=u(ks[12], (H, H)), b_o=u(ks[13], (H,)),
    )


def prepare_params(params, E, H):
    """One-time repack into the fused kernel layout."""
    def repack(a):  # last-dim 4H gate columns: (i,f,g,o) -> (i,f,o,g)
        return jnp.concatenate(
            [a[..., 0:2 * H], a[..., 3 * H:4 * H], a[..., 2 * H:3 * H]], axis=-1)

    w_ih = repack(params["w_ih"])                              # [E+H, 4H]
    w_hh = repack(params["w_hh"])                              # [H, 4H]
    b_g = repack((params["b_ih"] + params["b_hh"])[None, :])   # [1, 4H]
    w_gx = w_ih[:E, :]                                         # [E, 4H]
    w_rh = jnp.concatenate([w_ih[E:, :], w_hh], axis=0)        # [2H, 4H] rows [r; h]

    # Fused projection, ordered [o | v | d | u]; then pre-multiplied by w_ro so
    # rnn_output and (o,v,d,u) come out of ONE matmul:  [rnn | o | v | d | u | pad]
    w_proj = jnp.concatenate(
        [params["w_o"], params["w_v"], params["w_d"], params["w_u"]], axis=1)  # [H, 2H+2]
    b_proj = jnp.concatenate(
        [params["b_o"], params["b_v"], params["b_d"], params["b_u"]])          # [2H+2]
    w_ro, b_ro = params["w_ro"], params["b_ro"]
    w_f_core = jnp.concatenate([w_ro, w_ro @ w_proj], axis=1)                  # [H, 3H+2]
    b_f_core = jnp.concatenate([b_ro, b_ro @ w_proj + b_proj])                 # [3H+2]

    PF = ((3 * H + 2 + 127) // 128) * 128   # pad fused output to 128 lanes
    pad = PF - (3 * H + 2)
    w_f = jnp.concatenate([w_f_core, jnp.zeros((H, pad), jnp.float32)], axis=1)
    b_f = jnp.concatenate([b_f_core, jnp.zeros((pad,), jnp.float32)])[None, :]
    return dict(E=E, H=H, PF=PF, w_gx=w_gx, w_rh=w_rh, b_g=b_g, w_f=w_f, b_f=b_f)


# --------------------------------------------------------------------------
# Wrappers.
# --------------------------------------------------------------------------
def lstm_stack_sequence(prep, x_seq, state):
    """Run LSTMStackCell over a whole sequence inside ONE pallas_call (grid=(1,)).

    x_seq : [T, E]
    state : ((h0, c0), r0, prev_V or None, prev_s or None)   (PyTorch layout)
    returns (o_seq [T, H], ((h, c), r, V, s)) with the same per-step semantics
    as applying the PyTorch module T times.
    """
    (h0, c0), r0, prev_V, prev_s = state
    T, E = x_seq.shape
    H = h0.shape[1]
    PF = prep["PF"]
    # TODO(synk): depth0 / T are static (shapes depend on them); if initial stack
    # depths vary a lot at runtime, pad to a fixed S_max and pass the write
    # offset as a scalar-prefetch SMEM argument to avoid recompiles.
    depth0 = 0 if prev_V is None else prev_V.shape[0]
    S_max = depth0 + T

    V_init = jnp.zeros((S_max, H), jnp.float32)
    s_init = jnp.zeros((1, S_max), jnp.float32)
    if depth0:
        V_init = V_init.at[:depth0, :].set(prev_V)
        s_init = s_init.at[0, :depth0].set(prev_s.reshape(-1))
    init_state = jnp.concatenate([h0, c0, r0], axis=0)          # [3, H]

    const2 = lambda t: (0, 0)
    in_specs = [
        pl.BlockSpec((T, E), const2),           # x_seq      (resident)
        pl.BlockSpec((E, 4 * H), const2),       # w_gx
        pl.BlockSpec((2 * H, 4 * H), const2),   # w_rh
        pl.BlockSpec((1, 4 * H), const2),       # b_g
        pl.BlockSpec((H, PF), const2),          # w_f
        pl.BlockSpec((1, PF), const2),          # b_f
        pl.BlockSpec((3, H), const2),           # init h/c/r
        pl.BlockSpec((S_max, H), const2),       # V_init
        pl.BlockSpec((1, S_max), const2),       # s_init
    ]
    out_specs = (
        pl.BlockSpec((T, H), const2),           # o_seq (bulk writeback once)
        pl.BlockSpec((3, H), const2),           # final (h, c, r)
        pl.BlockSpec((S_max, H), const2),       # stack V
        pl.BlockSpec((1, S_max), const2),       # stack s (lane-major)
    )
    out_shape = (
        jax.ShapeDtypeStruct((T, H), jnp.float32),
        jax.ShapeDtypeStruct((3, H), jnp.float32),
        jax.ShapeDtypeStruct((S_max, H), jnp.float32),
        jax.ShapeDtypeStruct((1, S_max), jnp.float32),
    )

    # TODO(synk): on v7x, a batch of independent sequences should get a leading
    # "parallel" grid axis so both TensorCores are used; a single recurrent
    # sequence can only occupy one TC.
    o_seq, fin, V_out, s_out = pl.pallas_call(
        functools.partial(_lstm_stack_seq_kernel, depth0=depth0),
        grid=(1,),
        in_specs=in_specs,
        out_specs=out_specs,
        out_shape=out_shape,
        scratch_shapes=[pltpu.VMEM((T, 4 * H), jnp.float32)],
        compiler_params=pltpu.CompilerParams(
            dimension_semantics=("arbitrary",)),   # sequential recurrence
    )(x_seq, prep["w_gx"], prep["w_rh"], prep["b_g"], prep["w_f"], prep["b_f"],
      init_state, V_init, s_init)

    new_state = ((fin[0:1, :], fin[1:2, :]), fin[2:3, :],
                 V_out, s_out.reshape(S_max, 1))
    return o_seq, new_state


def lstm_stack_cell(prep, inpt, state):
    """Single-step API matching the PyTorch module's forward() (inpt: [1, E])."""
    o_t, new_state = lstm_stack_sequence(prep, inpt, state)
    return o_t, new_state


# --------------------------------------------------------------------------
# NumPy float64 reference reproducing the PyTorch forward step-by-step.
# --------------------------------------------------------------------------
def reference_sequence(params, x_seq, state):
    p = {k: np.asarray(v, np.float64) for k, v in params.items()}
    (h, c), r, V, s = state
    h = np.asarray(h, np.float64)
    c = np.asarray(c, np.float64)
    r = np.asarray(r, np.float64)
    V = None if V is None else np.asarray(V, np.float64)
    s = None if s is None else np.asarray(s, np.float64)
    x_seq = np.asarray(x_seq, np.float64)
    H = h.shape[1]
    sig = lambda z: 1.0 / (1.0 + np.exp(-z))
    tail = lambda a: np.flip(np.cumsum(np.flip(a, 0), 0), 0) - a

    outs, states = [], []
    for t in range(x_seq.shape[0]):
        x = x_seq[t:t + 1]
        rnn_in = np.concatenate([x, r], axis=1)
        gates = rnn_in @ p["w_ih"] + p["b_ih"] + h @ p["w_hh"] + p["b_hh"]
        i = sig(gates[:, :H]); f = sig(gates[:, H:2 * H])
        g = np.tanh(gates[:, 2 * H:3 * H]); og = sig(gates[:, 3 * H:])
        c = f * c + i * g
        h_raw = og * np.tanh(c)
        rnn_output = h_raw @ p["w_ro"] + p["b_ro"]
        d_t = rnn_output @ p["w_d"] + p["b_d"]
        u_t = rnn_output @ p["w_u"] + p["b_u"]
        v_t = rnn_output @ p["w_v"] + p["b_v"]
        o_t = rnn_output @ p["w_o"] + p["b_o"]
        V = v_t.copy() if V is None else np.concatenate([V, v_t], axis=0)
        if s is None:
            s = d_t.copy()
        else:
            shid = tail(s)
            s = np.maximum(s - np.maximum(u_t[0, 0] - shid, 0.0), 0.0)
            s = np.concatenate([s, d_t], axis=0)
        shid = tail(s)
        r_sc = np.minimum(s, np.maximum(1.0 - shid, 0.0))
        r = np.sum(r_sc * V, axis=0, keepdims=True)
        h = rnn_output                      # carried hidden is the projected output
        outs.append(o_t)
        states.append(((rnn_output.copy(), c.copy()), r.copy(), V.copy(), s.copy()))
    return np.concatenate(outs, axis=0), states


if __name__ == "__main__":
    E, H, S = 16, 32, 8   # embedding_dim, hidden_size, sequence length (batch=1)
    key = jax.random.PRNGKey(0)
    kp, kd = jax.random.split(key)
    params = init_params(kp, E, H)
    prep = prepare_params(params, E, H)

    ks = jax.random.split(kd, 4)
    x_seq = jax.random.normal(ks[0], (S, E), jnp.float32)
    h0 = 0.1 * jax.random.normal(ks[1], (1, H), jnp.float32)
    c0 = 0.1 * jax.random.normal(ks[2], (1, H), jnp.float32)
    r0 = 0.1 * jax.random.normal(ks[3], (1, H), jnp.float32)
    state0 = ((h0, c0), r0, None, None)    # empty stack at sequence start

    # ---- whole sequence in a single pallas_call (time loop inside kernel) ----
    o_seq, ((h_f, c_f), r_f, V_f, s_f) = lstm_stack_sequence(prep, x_seq, state0)
    jax.block_until_ready((o_seq, h_f, c_f, r_f, V_f, s_f))

    ref_o, ref_states = reference_sequence(params, x_seq, state0)
    (ref_h, ref_c), ref_r, ref_V, ref_s = ref_states[-1]
    # Loose enough for TPU MXU f32 precision over 8 recurrent steps + fused
    # (w_ro @ w_proj) repacking rounding.
    tol = dict(rtol=2e-2, atol=2e-2)
    np.testing.assert_allclose(np.asarray(o_seq), ref_o, err_msg="o_seq", **tol)
    np.testing.assert_allclose(np.asarray(h_f), ref_h, err_msg="h", **tol)
    np.testing.assert_allclose(np.asarray(c_f), ref_c, err_msg="c", **tol)
    np.testing.assert_allclose(np.asarray(r_f), ref_r, err_msg="r", **tol)
    np.testing.assert_allclose(np.asarray(V_f), ref_V, err_msg="V", **tol)
    np.testing.assert_allclose(np.asarray(s_f), ref_s, err_msg="s", **tol)

    # ---- single-step (cell) API starting from a non-empty stack ----
    (h3, c3), r3, V3, s3 = ref_states[2]   # state after 3 steps
    state3 = ((jnp.asarray(h3, jnp.float32), jnp.asarray(c3, jnp.float32)),
              jnp.asarray(r3, jnp.float32),
              jnp.asarray(V3, jnp.float32), jnp.asarray(s3, jnp.float32))
    o4, ((h4, c4), r4, V4, s4) = lstm_stack_cell(prep, x_seq[3:4], state3)
    jax.block_until_ready((o4, h4, c4, r4, V4, s4))
    (rh4, rc4), rr4, rV4, rs4 = ref_states[3]
    np.testing.assert_allclose(np.asarray(o4), ref_o[3:4], err_msg="cell o", **tol)
    np.testing.assert_allclose(np.asarray(h4), rh4, err_msg="cell h", **tol)
    np.testing.assert_allclose(np.asarray(c4), rc4, err_msg="cell c", **tol)
    np.testing.assert_allclose(np.asarray(r4), rr4, err_msg="cell r", **tol)
    np.testing.assert_allclose(np.asarray(V4), rV4, err_msg="cell V", **tol)
    np.testing.assert_allclose(np.asarray(s4), rs4, err_msg="cell s", **tol)

    print("KERNEL_OK")
</pallas_src>

<mosaic_0001>
module attributes {stable_mosaic.version = 11 : i64} {
  func.func @_lstm_stack_seq_kernel(%arg0: i32, %arg1: memref<8x16xf32, #tpu.memory_space<vmem>>, %arg2: memref<16x128xf32, #tpu.memory_space<vmem>>, %arg3: memref<64x128xf32, #tpu.memory_space<vmem>>, %arg4: memref<1x128xf32, #tpu.memory_space<vmem>>, %arg5: memref<32x128xf32, #tpu.memory_space<vmem>>, %arg6: memref<1x128xf32, #tpu.memory_space<vmem>>, %arg7: memref<3x32xf32, #tpu.memory_space<vmem>>, %arg8: memref<8x32xf32, #tpu.memory_space<vmem>>, %arg9: memref<1x8xf32, #tpu.memory_space<vmem>>, %arg10: memref<8x32xf32, #tpu.memory_space<vmem>>, %arg11: memref<3x32xf32, #tpu.memory_space<vmem>>, %arg12: memref<8x32xf32, #tpu.memory_space<vmem>>, %arg13: memref<1x8xf32, #tpu.memory_space<vmem>>, %arg14: memref<8x128xf32, #tpu.memory_space<vmem>>) attributes {dimension_semantics = [#tpu.dimension_semantics<arbitrary>], iteration_bounds = array<i64: 1>, scalar_prefetch = 0 : i64, scratch_operands = 1 : i64, tpu.core_type = #tpu.core_type<tc>, window_params = [{pipeline_mode = #tpu.pipeline_mode<synchronous>, transform_indices = @transform_0, window_bounds = array<i64: 8, 16>}, {pipeline_mode = #tpu.pipeline_mode<synchronous>, transform_indices = @transform_1, window_bounds = array<i64: 16, 128>}, {pipeline_mode = #tpu.pipeline_mode<synchronous>, transform_indices = @transform_2, window_bounds = array<i64: 64, 128>}, {pipeline_mode = #tpu.pipeline_mode<synchronous>, transform_indices = @transform_3, window_bounds = array<i64: 1, 128>}, {pipeline_mode = #tpu.pipeline_mode<synchronous>, transform_indices = @transform_4, window_bounds = array<i64: 32, 128>}, {pipeline_mode = #tpu.pipeline_mode<synchronous>, transform_indices = @transform_5, window_bounds = array<i64: 1, 128>}, {pipeline_mode = #tpu.pipeline_mode<synchronous>, transform_indices = @transform_6, window_bounds = array<i64: 3, 32>}, {pipeline_mode = #tpu.pipeline_mode<synchronous>, transform_indices = @transform_7, window_bounds = array<i64: 8, 32>}, {pipeline_mode = #tpu.pipeline_mode<synchronous>, transform_indices = @transform_8, window_bounds = array<i64: 1, 8>}, {pipeline_mode = #tpu.pipeline_mode<synchronous>, transform_indices = @transform_9, window_bounds = array<i64: 8, 32>}, {pipeline_mode = #tpu.pipeline_mode<synchronous>, transform_indices = @transform_10, window_bounds = array<i64: 3, 32>}, {pipeline_mode = #tpu.pipeline_mode<synchronous>, transform_indices = @transform_11, window_bounds = array<i64: 8, 32>}, {pipeline_mode = #tpu.pipeline_mode<synchronous>, transform_indices = @transform_12, window_bounds = array<i64: 1, 8>}]} {
    %c0 = arith.constant 0 : index
    %c0_0 = arith.constant 0 : index
    %0 = vector.load %arg8[%c0, %c0_0] : memref<8x32xf32, #tpu.memory_space<vmem>>, vector<8x32xf32>
    %c0_1 = arith.constant 0 : index
    %c0_2 = arith.constant 0 : index
    %1 = vector.load %arg12[%c0_1, %c0_2] : memref<8x32xf32, #tpu.memory_space<vmem>>, vector<8x32xf32>
    tpu.vector_store %arg12[%c0_1, %c0_2], %0 {strides = array<i32>} : memref<8x32xf32, #tpu.memory_space<vmem>>, vector<8x32xf32>,
    %c0_3 = arith.constant 0 : index
    %c0_4 = arith.constant 0 : index
    %2 = vector.load %arg1[%c0_3, %c0_4] : memref<8x16xf32, #tpu.memory_space<vmem>>, vector<8x16xf32>
    %c0_5 = arith.constant 0 : index
    %c0_6 = arith.constant 0 : index
    %3 = vector.load %arg2[%c0_5, %c0_6] : memref<16x128xf32, #tpu.memory_space<vmem>>, vector<16x128xf32>
    %cst = arith.constant dense<0.000000e+00> : vector<8x128xf32>
    %4 = tpu.matmul %2, %3, %cst {dimension_numbers = #tpu.dot_dimension_numbers<[1], [0], [0], [1], [0, 0, 1, 1], [], []>} : vector<8x16xf32>, vector<16x128xf32>, vector<8x128xf32> -> vector<8x128xf32>
    %c0_7 = arith.constant 0 : index
    %c0_8 = arith.constant 0 : index
    %5 = vector.load %arg4[%c0_7, %c0_8] : memref<1x128xf32, #tpu.memory_space<vmem>>, vector<1x128xf32>
    %6 = vector.broadcast %5 : vector<1x128xf32> to vector<8x128xf32>
    %7 = arith.addf %4, %6 : vector<8x128xf32>
    %c0_9 = arith.constant 0 : index
    %c0_10 = arith.constant 0 : index
    %8 = vector.load %arg14[%c0_9, %c0_10] : memref<8x128xf32, #tpu.memory_space<vmem>>, vector<8x128xf32>
    tpu.vector_store %arg14[%c0_9, %c0_10], %7 {strides = array<i32>} : memref<8x128xf32, #tpu.memory_space<vmem>>, vector<8x128xf32>,
    %c0_11 = arith.constant 0 : index
    %c0_12 = arith.constant 0 : index
    %9 = vector.load %arg3[%c0_11, %c0_12] : memref<64x128xf32, #tpu.memory_space<vmem>>, vector<64x128xf32>
    %c0_13 = arith.constant 0 : index
    %c0_14 = arith.constant 0 : index
    %10 = vector.load %arg5[%c0_13, %c0_14] : memref<32x128xf32, #tpu.memory_space<vmem>>, vector<32x128xf32>
    %c0_15 = arith.constant 0 : index
    %c0_16 = arith.constant 0 : index
    %11 = vector.load %arg6[%c0_15, %c0_16] : memref<1x128xf32, #tpu.memory_space<vmem>>, vector<1x128xf32>
    %12 = tpu.iota {dimensions = array<i32: 0>} : vector<8x8xi32>
    %13 = tpu.iota {dimensions = array<i32: 1>} : vector<8x8xi32>
    %14 = arith.cmpi sgt, %12, %13 : vector<8x8xi32>
    %15 = arith.extui %14 : vector<8x8xi1> to vector<8x8xi32>
    %16 = arith.sitofp %15 : vector<8x8xi32> to vector<8x8xf32>
    %17 = tpu.iota {dimensions = array<i32: 1>} : vector<1x8xi32>
    %c0_17 = arith.constant 0 : index
    %c0_18 = arith.constant 0 : index
    %18 = vector.load %arg7[%c0_17, %c0_18] : memref<3x32xf32, #tpu.memory_space<vmem>>, vector<1x32xf32>
    %c1 = arith.constant 1 : index
    %c0_19 = arith.constant 0 : index
    %19 = vector.load %arg7[%c1, %c0_19] : memref<3x32xf32, #tpu.memory_space<vmem>>, vector<1x32xf32>
    %c2 = arith.constant 2 : index
    %c0_20 = arith.constant 0 : index
    %20 = vector.load %arg7[%c2, %c0_20] : memref<3x32xf32, #tpu.memory_space<vmem>>, vector<1x32xf32>
    %c0_21 = arith.constant 0 : index
    %c0_22 = arith.constant 0 : index
    %21 = vector.load %arg9[%c0_21, %c0_22] : memref<1x8xf32, #tpu.memory_space<vmem>>, vector<1x8xf32>
    %cst_23 = arith.constant dense<0.000000e+00> : vector<1x8xf32>
    %22 = tpu.matmul %21, %16, %cst_23 {dimension_numbers = #tpu.dot_dimension_numbers<[1], [0], [0], [1], [0, 0, 1, 1], [], []>} : vector<1x8xf32>, vector<8x8xf32>, vector<1x8xf32> -> vector<1x8xf32>
    %c0_i32 = arith.constant 0 : i32
    %c0_i32_24 = arith.constant 0 : i32
    %23 = arith.addi %c0_i32, %c0_i32_24 : i32
    %24 = arith.index_cast %c0_i32 : i32 to index
    %c0_25 = arith.constant 0 : index
    %25 = vector.load %arg14[%24, %c0_25] : memref<8x128xf32, #tpu.memory_space<vmem>>, vector<1x128xf32>
    %26 = tpu.concatenate %20, %18 in 1 : vector<1x32xf32>, vector<1x32xf32> -> vector<1x64xf32>
    %cst_26 = arith.constant dense<0.000000e+00> : vector<1x128xf32>
    %27 = tpu.matmul %26, %9, %cst_26 {dimension_numbers = #tpu.dot_dimension_numbers<[1], [0], [0], [1], [0, 0, 1, 1], [], []>} : vector<1x64xf32>, vector<64x128xf32>, vector<1x128xf32> -> vector<1x128xf32>
    %28 = arith.addf %25, %27 : vector<1x128xf32>
    %29 = vector.extract_strided_slice %28 {offsets = [0, 0], sizes = [1, 96], strides = [1, 1]} : vector<1x128xf32> to vector<1x96xf32>
    %30 = arith.negf %29 : vector<1x96xf32>
    %31 = math.exp %30 : vector<1x96xf32>
    %cst_27 = arith.constant 1.000000e+00 : f32
    %32 = vector.broadcast %cst_27 : f32 to vector<1x96xf32>
    %33 = arith.addf %32, %31 : vector<1x96xf32>
    %34 = arith.divf %32, %33 : vector<1x96xf32>
    %35 = vector.extract_strided_slice %28 {offsets = [0, 96], sizes = [1, 32], strides = [1, 1]} : vector<1x128xf32> to vector<1x32xf32>
    %36 = math.tanh %35 : vector<1x32xf32>
    %37 = vector.extract_strided_slice %34 {offsets = [0, 32], sizes = [1, 32], strides = [1, 1]} : vector<1x96xf32> to vector<1x32xf32>
    %38 = arith.mulf %37, %19 : vector<1x32xf32>
    %39 = vector.extract_strided_slice %34 {offsets = [0, 0], sizes = [1, 32], strides = [1, 1]} : vector<1x96xf32> to vector<1x32xf32>
    %40 = arith.mulf %39, %36 : vector<1x32xf32>
    %41 = arith.addf %38, %40 : vector<1x32xf32>
    %42 = vector.extract_strided_slice %34 {offsets = [0, 64], sizes = [1, 32], strides = [1, 1]} : vector<1x96xf32> to vector<1x32xf32>
    %43 = math.tanh %41 : vector<1x32xf32>
    %44 = arith.mulf %42, %43 : vector<1x32xf32>
    %cst_28 = arith.constant dense<0.000000e+00> : vector<1x128xf32>
    %45 = tpu.matmul %44, %10, %cst_28 {dimension_numbers = #tpu.dot_dimension_numbers<[1], [0], [0], [1], [0, 0, 1, 1], [], []>} : vector<1x32xf32>, vector<32x128xf32>, vector<1x128xf32> -> vector<1x128xf32>
    %46 = arith.addf %45, %11 : vector<1x128xf32>
    %47 = vector.extract_strided_slice %46 {offsets = [0, 0], sizes = [1, 32], strides = [1, 1]} : vector<1x128xf32> to vector<1x32xf32>
    %48 = vector.extract_strided_slice %46 {offsets = [0, 32], sizes = [1, 32], strides = [1, 1]} : vector<1x128xf32> to vector<1x32xf32>
    %49 = vector.extract_strided_slice %46 {offsets = [0, 64], sizes = [1, 32], strides = [1, 1]} : vector<1x128xf32> to vector<1x32xf32>
    %50 = vector.extract_strided_slice %46 {offsets = [0, 96], sizes = [1, 1], strides = [1, 1]} : vector<1x128xf32> to vector<1x1xf32>
    %51 = vector.extract_strided_slice %46 {offsets = [0, 97], sizes = [1, 1], strides = [1, 1]} : vector<1x128xf32> to vector<1x1xf32>
    %52 = vector.broadcast %51 : vector<1x1xf32> to vector<1x8xf32>
    %53 = arith.subf %52, %22 : vector<1x8xf32>
    %cst_29 = arith.constant 0.000000e+00 : f32
    %54 = vector.broadcast %cst_29 : f32 to vector<1x8xf32>
    %55 = arith.maximumf %53, %54 : vector<1x8xf32>
    %56 = arith.subf %21, %55 : vector<1x8xf32>
    %cst_30 = arith.constant 0.000000e+00 : f32
    %57 = vector.broadcast %cst_30 : f32 to vector<1x8xf32>
    %58 = arith.maximumf %56, %57 : vector<1x8xf32>
    %59 = vector.broadcast %23 : i32 to vector<1x8xi32>
    %60 = arith.cmpi eq, %17, %59 : vector<1x8xi32>
    %61 = vector.shape_cast %50 : vector<1x1xf32> to vector<1x1xf32>
    %62 = vector.broadcast %61 : vector<1x1xf32> to vector<1x8xf32>
    %63 = arith.select %60, %62, %58 : vector<1x8xi1>, vector<1x8xf32>
    %64 = arith.index_cast %23 : i32 to index
    %c0_31 = arith.constant 0 : index
    %65 = vector.load %arg12[%64, %c0_31] : memref<8x32xf32, #tpu.memory_space<vmem>>, vector<1x32xf32>
    tpu.vector_store %arg12[%64, %c0_31], %49 {strides = array<i32>} : memref<8x32xf32, #tpu.memory_space<vmem>>, vector<1x32xf32>,
    %cst_32 = arith.constant dense<0.000000e+00> : vector<1x8xf32>
    %66 = tpu.matmul %63, %16, %cst_32 {dimension_numbers = #tpu.dot_dimension_numbers<[1], [0], [0], [1], [0, 0, 1, 1], [], []>} : vector<1x8xf32>, vector<8x8xf32>, vector<1x8xf32> -> vector<1x8xf32>
    %cst_33 = arith.constant 1.000000e+00 : f32
    %67 = vector.broadcast %cst_33 : f32 to vector<1x8xf32>
    %68 = arith.subf %67, %66 : vector<1x8xf32>
    %cst_34 = arith.constant 0.000000e+00 : f32
    %69 = vector.broadcast %cst_34 : f32 to vector<1x8xf32>
    %70 = arith.maximumf %68, %69 : vector<1x8xf32>
    %71 = arith.minimumf %63, %70 : vector<1x8xf32>
    %c0_35 = arith.constant 0 : index
    %c0_36 = arith.constant 0 : index
    %72 = vector.load %arg12[%c0_35, %c0_36] : memref<8x32xf32, #tpu.memory_space<vmem>>, vector<8x32xf32>
    %cst_37 = arith.constant dense<0.000000e+00> : vector<1x32xf32>
    %73 = tpu.matmul %71, %72, %cst_37 {dimension_numbers = #tpu.dot_dimension_numbers<[1], [0], [0], [1], [0, 0, 1, 1], [], []>} : vector<1x8xf32>, vector<8x32xf32>, vector<1x32xf32> -> vector<1x32xf32>
    %74 = arith.index_cast %c0_i32 : i32 to index
    %c0_38 = arith.constant 0 : index
    %75 = vector.load %arg10[%74, %c0_38] : memref<8x32xf32, #tpu.memory_space<vmem>>, vector<1x32xf32>
    tpu.vector_store %arg10[%74, %c0_38], %48 {strides = array<i32>} : memref<8x32xf32, #tpu.memory_space<vmem>>, vector<1x32xf32>,
    %c1_i32 = arith.constant 1 : i32
    %c0_i32_39 = arith.constant 0 : i32
    %76 = arith.addi %c1_i32, %c0_i32_39 : i32
    %77 = arith.index_cast %c1_i32 : i32 to index
    %c0_40 = arith.constant 0 : index
    %78 = vector.load %arg14[%77, %c0_40] : memref<8x128xf32, #tpu.memory_space<vmem>>, vector<1x128xf32>
    %79 = tpu.concatenate %73, %47 in 1 : vector<1x32xf32>, vector<1x32xf32> -> vector<1x64xf32>
    %cst_41 = arith.constant dense<0.000000e+00> : vector<1x128xf32>
    %80 = tpu.matmul %79, %9, %cst_41 {dimension_numbers = #tpu.dot_dimension_numbers<[1], [0], [0], [1], [0, 0, 1, 1], [], []>} : vector<1x64xf32>, vector<64x128xf32>, vector<1x128xf32> -> vector<1x128xf32>
    %81 = arith.addf %78, %80 : vector<1x128xf32>
    %82 = vector.extract_strided_slice %81 {offsets = [0, 0], sizes = [1, 96], strides = [1, 1]} : vector<1x128xf32> to vector<1x96xf32>
    %83 = arith.negf %82 : vector<1x96xf32>
    %84 = math.exp %83 : vector<1x96xf32>
    %cst_42 = arith.constant 1.000000e+00 : f32
    %85 = vector.broadcast %cst_42 : f32 to vector<1x96xf32>
    %86 = arith.addf %85, %84 : vector<1x96xf32>
    %87 = arith.divf %85, %86 : vector<1x96xf32>
    %88 = vector.extract_strided_slice %81 {offsets = [0, 96], sizes = [1, 32], strides = [1, 1]} : vector<1x128xf32> to vector<1x32xf32>
    %89 = math.tanh %88 : vector<1x32xf32>
    %90 = vector.extract_strided_slice %87 {offsets = [0, 32], sizes = [1, 32], strides = [1, 1]} : vector<1x96xf32> to vector<1x32xf32>
    %91 = arith.mulf %90, %41 : vector<1x32xf32>
    %92 = vector.extract_strided_slice %87 {offsets = [0, 0], sizes = [1, 32], strides = [1, 1]} : vector<1x96xf32> to vector<1x32xf32>
    %93 = arith.mulf %92, %89 : vector<1x32xf32>
    %94 = arith.addf %91, %93 : vector<1x32xf32>
    %95 = vector.extract_strided_slice %87 {offsets = [0, 64], sizes = [1, 32], strides = [1, 1]} : vector<1x96xf32> to vector<1x32xf32>
    %96 = math.tanh %94 : vector<1x32xf32>
    %97 = arith.mulf %95, %96 : vector<1x32xf32>
    %cst_43 = arith.constant dense<0.000000e+00> : vector<1x128xf32>
    %98 = tpu.matmul %97, %10, %cst_43 {dimension_numbers = #tpu.dot_dimension_numbers<[1], [0], [0], [1], [0, 0, 1, 1], [], []>} : vector<1x32xf32>, vector<32x128xf32>, vector<1x128xf32> -> vector<1x128xf32>
    %99 = arith.addf %98, %11 : vector<1x128xf32>
    %100 = vector.extract_strided_slice %99 {offsets = [0, 0], sizes = [1, 32], strides = [1, 1]} : vector<1x128xf32> to vector<1x32xf32>
    %101 = vector.extract_strided_slice %99 {offsets = [0, 32], sizes = [1, 32], strides = [1, 1]} : vector<1x128xf32> to vector<1x32xf32>
    %102 = vector.extract_strided_slice %99 {offsets = [0, 64], sizes = [1, 32], strides = [1, 1]} : vector<1x128xf32> to vector<1x32xf32>
    %103 = vector.extract_strided_slice %99 {offsets = [0, 96], sizes = [1, 1], strides = [1, 1]} : vector<1x128xf32> to vector<1x1xf32>
    %104 = vector.extract_strided_slice %99 {offsets = [0, 97], sizes = [1, 1], strides = [1, 1]} : vector<1x128xf32> to vector<1x1xf32>
    %105 = vector.broadcast %104 : vector<1x1xf32> to vector<1x8xf32>
    %106 = arith.subf %105, %66 : vector<1x8xf32>
    %cst_44 = arith.constant 0.000000e+00 : f32
    %107 = vector.broadcast %cst_44 : f32 to vector<1x8xf32>
    %108 = arith.maximumf %106, %107 : vector<1x8xf32>
    %109 = arith.subf %63, %108 : vector<1x8xf32>
    %cst_45 = arith.constant 0.000000e+00 : f32
    %110 = vector.broadcast %cst_45 : f32 to vector<1x8xf32>
    %111 = arith.maximumf %109, %110 : vector<1x8xf32>
    %112 = vector.broadcast %76 : i32 to vector<1x8xi32>
    %113 = arith.cmpi eq, %17, %112 : vector<1x8xi32>
    %114 = vector.shape_cast %103 : vector<1x1xf32> to vector<1x1xf32>
    %115 = vector.broadcast %114 : vector<1x1xf32> to vector<1x8xf32>
    %116 = arith.select %113, %115, %111 : vector<1x8xi1>, vector<1x8xf32>
    %117 = arith.index_cast %76 : i32 to index
    %c0_46 = arith.constant 0 : index
    %118 = vector.load %arg12[%117, %c0_46] : memref<8x32xf32, #tpu.memory_space<vmem>>, vector<1x32xf32>
    tpu.vector_store %arg12[%117, %c0_46], %102 {strides = array<i32>} : memref<8x32xf32, #tpu.memory_space<vmem>>, vector<1x32xf32>,
    %cst_47 = arith.constant dense<0.000000e+00> : vector<1x8xf32>
    %119 = tpu.matmul %116, %16, %cst_47 {dimension_numbers = #tpu.dot_dimension_numbers<[1], [0], [0], [1], [0, 0, 1, 1], [], []>} : vector<1x8xf32>, vector<8x8xf32>, vector<1x8xf32> -> vector<1x8xf32>
    %cst_48 = arith.constant 1.000000e+00 : f32
    %120 = vector.broadcast %cst_48 : f32 to vector<1x8xf32>
    %121 = arith.subf %120, %119 : vector<1x8xf32>
    %cst_49 = arith.constant 0.000000e+00 : f32
    %122 = vector.broadcast %cst_49 : f32 to vector<1x8xf32>
    %123 = arith.maximumf %121, %122 : vector<1x8xf32>
    %124 = arith.minimumf %116, %123 : vector<1x8xf32>
    %c0_50 = arith.constant 0 : index
    %c0_51 = arith.constant 0 : index
    %125 = vector.load %arg12[%c0_50, %c0_51] : memref<8x32xf32, #tpu.memory_space<vmem>>, vector<8x32xf32>
    %cst_52 = arith.constant dense<0.000000e+00> : vector<1x32xf32>
    %126 = tpu.matmul %124, %125, %cst_52 {dimension_numbers = #tpu.dot_dimension_numbers<[1], [0], [0], [1], [0, 0, 1, 1], [], []>} : vector<1x8xf32>, vector<8x32xf32>, vector<1x32xf32> -> vector<1x32xf32>
    %127 = arith.index_cast %c1_i32 : i32 to index
    %c0_53 = arith.constant 0 : index
    %128 = vector.load %arg10[%127, %c0_53] : memref<8x32xf32, #tpu.memory_space<vmem>>, vector<1x32xf32>
    tpu.vector_store %arg10[%127, %c0_53], %101 {strides = array<i32>} : memref<8x32xf32, #tpu.memory_space<vmem>>, vector<1x32xf32>,
    %c2_i32 = arith.constant 2 : i32
    %c0_i32_54 = arith.constant 0 : i32
    %129 = arith.addi %c2_i32, %c0_i32_54 : i32
    %130 = arith.index_cast %c2_i32 : i32 to index
    %c0_55 = arith.constant 0 : index
    %131 = vector.load %arg14[%130, %c0_55] : memref<8x128xf32, #tpu.memory_space<vmem>>, vector<1x128xf32>
    %132 = tpu.concatenate %126, %100 in 1 : vector<1x32xf32>, vector<1x32xf32> -> vector<1x64xf32>
    %cst_56 = arith.constant dense<0.000000e+00> : vector<1x128xf32>
    %133 = tpu.matmul %132, %9, %cst_56 {dimension_numbers = #tpu.dot_dimension_numbers<[1], [0], [0], [1], [0, 0, 1, 1], [], []>} : vector<1x64xf32>, vector<64x128xf32>, vector<1x128xf32> -> vector<1x128xf32>
    %134 = arith.addf %131, %133 : vector<1x128xf32>
    %135 = vector.extract_strided_slice %134 {offsets = [0, 0], sizes = [1, 96], strides = [1, 1]} : vector<1x128xf32> to vector<1x96xf32>
    %136 = arith.negf %135 : vector<1x96xf32>
    %137 = math.exp %136 : vector<1x96xf32>
    %cst_57 = arith.constant 1.000000e+00 : f32
    %138 = vector.broadcast %cst_57 : f32 to vector<1x96xf32>
    %139 = arith.addf %138, %137 : vector<1x96xf32>
    %140 = arith.divf %138, %139 : vector<1x96xf32>
    %141 = vector.extract_strided_slice %134 {offsets = [0, 96], sizes = [1, 32], strides = [1, 1]} : vector<1x128xf32> to vector<1x32xf32>
    %142 = math.tanh %141 : vector<1x32xf32>
    %143 = vector.extract_strided_slice %140 {offsets = [0, 32], sizes = [1, 32], strides = [1, 1]} : vector<1x96xf32> to vector<1x32xf32>
    %144 = arith.mulf %143, %94 : vector<1x32xf32>
    %145 = vector.extract_strided_slice %140 {offsets = [0, 0], sizes = [1, 32], strides = [1, 1]} : vector<1x96xf32> to vector<1x32xf32>
    %146 = arith.mulf %145, %142 : vector<1x32xf32>
    %147 = arith.addf %144, %146 : vector<1x32xf32>
    %148 = vector.extract_strided_slice %140 {offsets = [0, 64], sizes = [1, 32], strides = [1, 1]} : vector<1x96xf32> to vector<1x32xf32>
    %149 = math.tanh %147 : vector<1x32xf32>
    %150 = arith.mulf %148, %149 : vector<1x32xf32>
    %cst_58 = arith.constant dense<0.000000e+00> : vector<1x128xf32>
    %151 = tpu.matmul %150, %10, %cst_58 {dimension_numbers = #tpu.dot_dimension_numbers<[1], [0], [0], [1], [0, 0, 1, 1], [], []>} : vector<1x32xf32>, vector<32x128xf32>, vector<1x128xf32> -> vector<1x128xf32>
    %152 = arith.addf %151, %11 : vector<1x128xf32>
    %153 = vector.extract_strided_slice %152 {offsets = [0, 0], sizes = [1, 32], strides = [1, 1]} : vector<1x128xf32> to vector<1x32xf32>
    %154 = vector.extract_strided_slice %152 {offsets = [0, 32], sizes = [1, 32], strides = [1, 1]} : vector<1x128xf32> to vector<1x32xf32>
    %155 = vector.extract_strided_slice %152 {offsets = [0, 64], sizes = [1, 32], strides = [1, 1]} : vector<1x128xf32> to vector<1x32xf32>
    %156 = vector.extract_strided_slice %152 {offsets = [0, 96], sizes = [1, 1], strides = [1, 1]} : vector<1x128xf32> to vector<1x1xf32>
    %157 = vector.extract_strided_slice %152 {offsets = [0, 97], sizes = [1, 1], strides = [1, 1]} : vector<1x128xf32> to vector<1x1xf32>
    %158 = vector.broadcast %157 : vector<1x1xf32> to vector<1x8xf32>
    %159 = arith.subf %158, %119 : vector<1x8xf32>
    %cst_59 = arith.constant 0.000000e+00 : f32
    %160 = vector.broadcast %cst_59 : f32 to vector<1x8xf32>
    %161 = arith.maximumf %159, %160 : vector<1x8xf32>
    %162 = arith.subf %116, %161 : vector<1x8xf32>
    %cst_60 = arith.constant 0.000000e+00 : f32
    %163 = vector.broadcast %cst_60 : f32 to vector<1x8xf32>
    %164 = arith.maximumf %162, %163 : vector<1x8xf32>
    %165 = vector.broadcast %129 : i32 to vector<1x8xi32>
    %166 = arith.cmpi eq, %17, %165 : vector<1x8xi32>
    %167 = vector.shape_cast %156 : vector<1x1xf32> to vector<1x1xf32>
    %168 = vector.broadcast %167 : vector<1x1xf32> to vector<1x8xf32>
    %169 = arith.select %166, %168, %164 : vector<1x8xi1>, vector<1x8xf32>
    %170 = arith.index_cast %129 : i32 to index
    %c0_61 = arith.constant 0 : index
    %171 = vector.load %arg12[%170, %c0_61] : memref<8x32xf32, #tpu.memory_space<vmem>>, vector<1x32xf32>
    tpu.vector_store %arg12[%170, %c0_61], %155 {strides = array<i32>} : memref<8x32xf32, #tpu.memory_space<vmem>>, vector<1x32xf32>,
    %cst_62 = arith.constant dense<0.000000e+00> : vector<1x8xf32>
    %172 = tpu.matmul %169, %16, %cst_62 {dimension_numbers = #tpu.dot_dimension_numbers<[1], [0], [0], [1], [0, 0, 1, 1], [], []>} : vector<1x8xf32>, vector<8x8xf32>, vector<1x8xf32> -> vector<1x8xf32>
    %cst_63 = arith.constant 1.000000e+00 : f32
    %173 = vector.broadcast %cst_63 : f32 to vector<1x8xf32>
    %174 = arith.subf %173, %172 : vector<1x8xf32>
    %cst_64 = arith.constant 0.000000e+00 : f32
    %175 = vector.broadcast %cst_64 : f32 to vector<1x8xf32>
    %176 = arith.maximumf %174, %175 : vector<1x8xf32>
    %177 = arith.minimumf %169, %176 : vector<1x8xf32>
    %c0_65 = arith.constant 0 : index
    %c0_66 = arith.constant 0 : index
    %178 = vector.load %arg12[%c0_65, %c0_66] : memref<8x32xf32, #tpu.memory_space<vmem>>, vector<8x32xf32>
    %cst_67 = arith.constant dense<0.000000e+00> : vector<1x32xf32>
    %179 = tpu.matmul %177, %178, %cst_67 {dimension_numbers = #tpu.dot_dimension_numbers<[1], [0], [0], [1], [0, 0, 1, 1], [], []>} : vector<1x8xf32>, vector<8x32xf32>, vector<1x32xf32> -> vector<1x32xf32>
    %180 = arith.index_cast %c2_i32 : i32 to index
    %c0_68 = arith.constant 0 : index
    %181 = vector.load %arg10[%180, %c0_68] : memref<8x32xf32, #tpu.memory_space<vmem>>, vector<1x32xf32>
    tpu.vector_store %arg10[%180, %c0_68], %154 {strides = array<i32>} : memref<8x32xf32, #tpu.memory_space<vmem>>, vector<1x32xf32>,
    %c3_i32 = arith.constant 3 : i32
    %c0_i32_69 = arith.constant 0 : i32
    %182 = arith.addi %c3_i32, %c0_i32_69 : i32
    %183 = arith.index_cast %c3_i32 : i32 to index
    %c0_70 = arith.constant 0 : index
    %184 = vector.load %arg14[%183, %c0_70] : memref<8x128xf32, #tpu.memory_space<vmem>>, vector<1x128xf32>
    %185 = tpu.concatenate %179, %153 in 1 : vector<1x32xf32>, vector<1x32xf32> -> vector<1x64xf32>
    %cst_71 = arith.constant dense<0.000000e+00> : vector<1x128xf32>
    %186 = tpu.matmul %185, %9, %cst_71 {dimension_numbers = #tpu.dot_dimension_numbers<[1], [0], [0], [1], [0, 0, 1, 1], [], []>} : vector<1x64xf32>, vector<64x128xf32>, vector<1x128xf32> -> vector<1x128xf32>
    %187 = arith.addf %184, %186 : vector<1x128xf32>
    %188 = vector.extract_strided_slice %187 {offsets = [0, 0], sizes = [1, 96], strides = [1, 1]} : vector<1x128xf32> to vector<1x96xf32>
    %189 = arith.negf %188 : vector<1x96xf32>
    %190 = math.exp %189 : vector<1x96xf32>
    %cst_72 = arith.constant 1.000000e+00 : f32
    %191 = vector.broadcast %cst_72 : f32 to vector<1x96xf32>
    %192 = arith.addf %191, %190 : vector<1x96xf32>
    %193 = arith.divf %191, %192 : vector<1x96xf32>
    %194 = vector.extract_strided_slice %187 {offsets = [0, 96], sizes = [1, 32], strides = [1, 1]} : vector<1x128xf32> to vector<1x32xf32>
    %195 = math.tanh %194 : vector<1x32xf32>
    %196 = vector.extract_strided_slice %193 {offsets = [0, 32], sizes = [1, 32], strides = [1, 1]} : vector<1x96xf32> to vector<1x32xf32>
    %197 = arith.mulf %196, %147 : vector<1x32xf32>
    %198 = vector.extract_strided_slice %193 {offsets = [0, 0], sizes = [1, 32], strides = [1, 1]} : vector<1x96xf32> to vector<1x32xf32>
    %199 = arith.mulf %198, %195 : vector<1x32xf32>
    %200 = arith.addf %197, %199 : vector<1x32xf32>
    %201 = vector.extract_strided_slice %193 {offsets = [0, 64], sizes = [1, 32], strides = [1, 1]} : vector<1x96xf32> to vector<1x32xf32>
    %202 = math.tanh %200 : vector<1x32xf32>
    %203 = arith.mulf %201, %202 : vector<1x32xf32>
    %cst_73 = arith.constant dense<0.000000e+00> : vector<1x128xf32>
    %204 = tpu.matmul %203, %10, %cst_73 {dimension_numbers = #tpu.dot_dimension_numbers<[1], [0], [0], [1], [0, 0, 1, 1], [], []>} : vector<1x32xf32>, vector<32x128xf32>, vector<1x128xf32> -> vector<1x128xf32>
    %205 = arith.addf %204, %11 : vector<1x128xf32>
    %206 = vector.extract_strided_slice %205 {offsets = [0, 0], sizes = [1, 32], strides = [1, 1]} : vector<1x128xf32> to vector<1x32xf32>
    %207 = vector.extract_strided_slice %205 {offsets = [0, 32], sizes = [1, 32], strides = [1, 1]} : vector<1x128xf32> to vector<1x32xf32>
    %208 = vector.extract_strided_slice %205 {offsets = [0, 64], sizes = [1, 32], strides = [1, 1]} : vector<1x128xf32> to vector<1x32xf32>
    %209 = vector.extract_strided_slice %205 {offsets = [0, 96], sizes = [1, 1], strides = [1, 1]} : vector<1x128xf32> to vector<1x1xf32>
    %210 = vector.extract_strided_slice %205 {offsets = [0, 97], sizes = [1, 1], strides = [1, 1]} : vector<1x128xf32> to vector<1x1xf32>
    %211 = vector.broadcast %210 : vector<1x1xf32> to vector<1x8xf32>
    %212 = arith.subf %211, %172 : vector<1x8xf32>
    %cst_74 = arith.constant 0.000000e+00 : f32
    %213 = vector.broadcast %cst_74 : f32 to vector<1x8xf32>
    %214 = arith.maximumf %212, %213 : vector<1x8xf32>
    %215 = arith.subf %169, %214 : vector<1x8xf32>
    %cst_75 = arith.constant 0.000000e+00 : f32
    %216 = vector.broadcast %cst_75 : f32 to vector<1x8xf32>
    %217 = arith.maximumf %215, %216 : vector<1x8xf32>
    %218 = vector.broadcast %182 : i32 to vector<1x8xi32>
    %219 = arith.cmpi eq, %17, %218 : vector<1x8xi32>
    %220 = vector.shape_cast %209 : vector<1x1xf32> to vector<1x1xf32>
    %221 = vector.broadcast %220 : vector<1x1xf32> to vector<1x8xf32>
    %222 = arith.select %219, %221, %217 : vector<1x8xi1>, vector<1x8xf32>
    %223 = arith.index_cast %182 : i32 to index
    %c0_76 = arith.constant 0 : index
    %224 = vector.load %arg12[%223, %c0_76] : memref<8x32xf32, #tpu.memory_space<vmem>>, vector<1x32xf32>
    tpu.vector_store %arg12[%223, %c0_76], %208 {strides = array<i32>} : memref<8x32xf32, #tpu.memory_space<vmem>>, vector<1x32xf32>,
    %cst_77 = arith.constant dense<0.000000e+00> : vector<1x8xf32>
    %225 = tpu.matmul %222, %16, %cst_77 {dimension_numbers = #tpu.dot_dimension_numbers<[1], [0], [0], [1], [0, 0, 1, 1], [], []>} : vector<1x8xf32>, vector<8x8xf32>, vector<1x8xf32> -> vector<1x8xf32>
    %cst_78 = arith.constant 1.000000e+00 : f32
    %226 = vector.broadcast %cst_78 : f32 to vector<1x8xf32>
    %227 = arith.subf %226, %225 : vector<1x8xf32>
    %cst_79 = arith.constant 0.000000e+00 : f32
    %228 = vector.broadcast %cst_79 : f32 to vector<1x8xf32>
    %229 = arith.maximumf %227, %228 : vector<1x8xf32>
    %230 = arith.minimumf %222, %229 : vector<1x8xf32>
    %c0_80 = arith.constant 0 : index
    %c0_81 = arith.constant 0 : index
    %231 = vector.load %arg12[%c0_80, %c0_81] : memref<8x32xf32, #tpu.memory_space<vmem>>, vector<8x32xf32>
    %cst_82 = arith.constant dense<0.000000e+00> : vector<1x32xf32>
    %232 = tpu.matmul %230, %231, %cst_82 {dimension_numbers = #tpu.dot_dimension_numbers<[1], [0], [0], [1], [0, 0, 1, 1], [], []>} : vector<1x8xf32>, vector<8x32xf32>, vector<1x32xf32> -> vector<1x32xf32>
    %233 = arith.index_cast %c3_i32 : i32 to index
    %c0_83 = arith.constant 0 : index
    %234 = vector.load %arg10[%233, %c0_83] : memref<8x32xf32, #tpu.memory_space<vmem>>, vector<1x32xf32>
    tpu.vector_store %arg10[%233, %c0_83], %207 {strides = array<i32>} : memref<8x32xf32, #tpu.memory_space<vmem>>, vector<1x32xf32>,
    %c4_i32 = arith.constant 4 : i32
    %c0_i32_84 = arith.constant 0 : i32
    %235 = arith.addi %c4_i32, %c0_i32_84 : i32
    %236 = arith.index_cast %c4_i32 : i32 to index
    %c0_85 = arith.constant 0 : index
    %237 = vector.load %arg14[%236, %c0_85] : memref<8x128xf32, #tpu.memory_space<vmem>>, vector<1x128xf32>
    %238 = tpu.concatenate %232, %206 in 1 : vector<1x32xf32>, vector<1x32xf32> -> vector<1x64xf32>
    %cst_86 = arith.constant dense<0.000000e+00> : vector<1x128xf32>
    %239 = tpu.matmul %238, %9, %cst_86 {dimension_numbers = #tpu.dot_dimension_numbers<[1], [0], [0], [1], [0, 0, 1, 1], [], []>} : vector<1x64xf32>, vector<64x128xf32>, vector<1x128xf32> -> vector<1x128xf32>
    %240 = arith.addf %237, %239 : vector<1x128xf32>
    %241 = vector.extract_strided_slice %240 {offsets = [0, 0], sizes = [1, 96], strides = [1, 1]} : vector<1x128xf32> to vector<1x96xf32>
    %242 = arith.negf %241 : vector<1x96xf32>
    %243 = math.exp %242 : vector<1x96xf32>
    %cst_87 = arith.constant 1.000000e+00 : f32
    %244 = vector.broadcast %cst_87 : f32 to vector<1x96xf32>
    %245 = arith.addf %244, %243 : vector<1x96xf32>
    %246 = arith.divf %244, %245 : vector<1x96xf32>
    %247 = vector.extract_strided_slice %240 {offsets = [0, 96], sizes = [1, 32], strides = [1, 1]} : vector<1x128xf32> to vector<1x32xf32>
    %248 = math.tanh %247 : vector<1x32xf32>
    %249 = vector.extract_strided_slice %246 {offsets = [0, 32], sizes = [1, 32], strides = [1, 1]} : vector<1x96xf32> to vector<1x32xf32>
    %250 = arith.mulf %249, %200 : vector<1x32xf32>
    %251 = vector.extract_strided_slice %246 {offsets = [0, 0], sizes = [1, 32], strides = [1, 1]} : vector<1x96xf32> to vector<1x32xf32>
    %252 = arith.mulf %251, %248 : vector<1x32xf32>
    %253 = arith.addf %250, %252 : vector<1x32xf32>
    %254 = vector.extract_strided_slice %246 {offsets = [0, 64], sizes = [1, 32], strides = [1, 1]} : vector<1x96xf32> to vector<1x32xf32>
    %255 = math.tanh %253 : vector<1x32xf32>
    %256 = arith.mulf %254, %255 : vector<1x32xf32>
    %cst_88 = arith.constant dense<0.000000e+00> : vector<1x128xf32>
    %257 = tpu.matmul %256, %10, %cst_88 {dimension_numbers = #tpu.dot_dimension_numbers<[1], [0], [0], [1], [0, 0, 1, 1], [], []>} : vector<1x32xf32>, vector<32x128xf32>, vector<1x128xf32> -> vector<1x128xf32>
    %258 = arith.addf %257, %11 : vector<1x128xf32>
    %259 = vector.extract_strided_slice %258 {offsets = [0, 0], sizes = [1, 32], strides = [1, 1]} : vector<1x128xf32> to vector<1x32xf32>
    %260 = vector.extract_strided_slice %258 {offsets = [0, 32], sizes = [1, 32], strides = [1, 1]} : vector<1x128xf32> to vector<1x32xf32>
    %261 = vector.extract_strided_slice %258 {offsets = [0, 64], sizes = [1, 32], strides = [1, 1]} : vector<1x128xf32> to vector<1x32xf32>
    %262 = vector.extract_strided_slice %258 {offsets = [0, 96], sizes = [1, 1], strides = [1, 1]} : vector<1x128xf32> to vector<1x1xf32>
    %263 = vector.extract_strided_slice %258 {offsets = [0, 97], sizes = [1, 1], strides = [1, 1]} : vector<1x128xf32> to vector<1x1xf32>
    %264 = vector.broadcast %263 : vector<1x1xf32> to vector<1x8xf32>
    %265 = arith.subf %264, %225 : vector<1x8xf32>
    %cst_89 = arith.constant 0.000000e+00 : f32
    %266 = vector.broadcast %cst_89 : f32 to vector<1x8xf32>
    %267 = arith.maximumf %265, %266 : vector<1x8xf32>
    %268 = arith.subf %222, %267 : vector<1x8xf32>
    %cst_90 = arith.constant 0.000000e+00 : f32
    %269 = vector.broadcast %cst_90 : f32 to vector<1x8xf32>
    %270 = arith.maximumf %268, %269 : vector<1x8xf32>
    %271 = vector.broadcast %235 : i32 to vector<1x8xi32>
    %272 = arith.cmpi eq, %17, %271 : vector<1x8xi32>
    %273 = vector.shape_cast %262 : vector<1x1xf32> to vector<1x1xf32>
    %274 = vector.broadcast %273 : vector<1x1xf32> to vector<1x8xf32>
    %275 = arith.select %272, %274, %270 : vector<1x8xi1>, vector<1x8xf32>
    %276 = arith.index_cast %235 : i32 to index
    %c0_91 = arith.constant 0 : index
    %277 = vector.load %arg12[%276, %c0_91] : memref<8x32xf32, #tpu.memory_space<vmem>>, vector<1x32xf32>
    tpu.vector_store %arg12[%276, %c0_91], %261 {strides = array<i32>} : memref<8x32xf32, #tpu.memory_space<vmem>>, vector<1x32xf32>,
    %cst_92 = arith.constant dense<0.000000e+00> : vector<1x8xf32>
    %278 = tpu.matmul %275, %16, %cst_92 {dimension_numbers = #tpu.dot_dimension_numbers<[1], [0], [0], [1], [0, 0, 1, 1], [], []>} : vector<1x8xf32>, vector<8x8xf32>, vector<1x8xf32> -> vector<1x8xf32>
    %cst_93 = arith.constant 1.000000e+00 : f32
    %279 = vector.broadcast %cst_93 : f32 to vector<1x8xf32>
    %280 = arith.subf %279, %278 : vector<1x8xf32>
    %cst_94 = arith.constant 0.000000e+00 : f32
    %281 = vector.broadcast %cst_94 : f32 to vector<1x8xf32>
    %282 = arith.maximumf %280, %281 : vector<1x8xf32>
    %283 = arith.minimumf %275, %282 : vector<1x8xf32>
    %c0_95 = arith.constant 0 : index
    %c0_96 = arith.constant 0 : index
    %284 = vector.load %arg12[%c0_95, %c0_96] : memref<8x32xf32, #tpu.memory_space<vmem>>, vector<8x32xf32>
    %cst_97 = arith.constant dense<0.000000e+00> : vector<1x32xf32>
    %285 = tpu.matmul %283, %284, %cst_97 {dimension_numbers = #tpu.dot_dimension_numbers<[1], [0], [0], [1], [0, 0, 1, 1], [], []>} : vector<1x8xf32>, vector<8x32xf32>, vector<1x32xf32> -> vector<1x32xf32>
    %286 = arith.index_cast %c4_i32 : i32 to index
    %c0_98 = arith.constant 0 : index
    %287 = vector.load %arg10[%286, %c0_98] : memref<8x32xf32, #tpu.memory_space<vmem>>, vector<1x32xf32>
    tpu.vector_store %arg10[%286, %c0_98], %260 {strides = array<i32>} : memref<8x32xf32, #tpu.memory_space<vmem>>, vector<1x32xf32>,
    %c5_i32 = arith.constant 5 : i32
    %c0_i32_99 = arith.constant 0 : i32
    %288 = arith.addi %c5_i32, %c0_i32_99 : i32
    %289 = arith.index_cast %c5_i32 : i32 to index
    %c0_100 = arith.constant 0 : index
    %290 = vector.load %arg14[%289, %c0_100] : memref<8x128xf32, #tpu.memory_space<vmem>>, vector<1x128xf32>
    %291 = tpu.concatenate %285, %259 in 1 : vector<1x32xf32>, vector<1x32xf32> -> vector<1x64xf32>
    %cst_101 = arith.constant dense<0.000000e+00> : vector<1x128xf32>
    %292 = tpu.matmul %291, %9, %cst_101 {dimension_numbers = #tpu.dot_dimension_numbers<[1], [0], [0], [1], [0, 0, 1, 1], [], []>} : vector<1x64xf32>, vector<64x128xf32>, vector<1x128xf32> -> vector<1x128xf32>
    %293 = arith.addf %290, %292 : vector<1x128xf32>
    %294 = vector.extract_strided_slice %293 {offsets = [0, 0], sizes = [1, 96], strides = [1, 1]} : vector<1x128xf32> to vector<1x96xf32>
    %295 = arith.negf %294 : vector<1x96xf32>
    %296 = math.exp %295 : vector<1x96xf32>
    %cst_102 = arith.constant 1.000000e+00 : f32
    %297 = vector.broadcast %cst_102 : f32 to vector<1x96xf32>
    %298 = arith.addf %297, %296 : vector<1x96xf32>
    %299 = arith.divf %297, %298 : vector<1x96xf32>
    %300 = vector.extract_strided_slice %293 {offsets = [0, 96], sizes = [1, 32], strides = [1, 1]} : vector<1x128xf32> to vector<1x32xf32>
    %301 = math.tanh %300 : vector<1x32xf32>
    %302 = vector.extract_strided_slice %299 {offsets = [0, 32], sizes = [1, 32], strides = [1, 1]} : vector<1x96xf32> to vector<1x32xf32>
    %303 = arith.mulf %302, %253 : vector<1x32xf32>
    %304 = vector.extract_strided_slice %299 {offsets = [0, 0], sizes = [1, 32], strides = [1, 1]} : vector<1x96xf32> to vector<1x32xf32>
    %305 = arith.mulf %304, %301 : vector<1x32xf32>
    %306 = arith.addf %303, %305 : vector<1x32xf32>
    %307 = vector.extract_strided_slice %299 {offsets = [0, 64], sizes = [1, 32], strides = [1, 1]} : vector<1x96xf32> to vector<1x32xf32>
    %308 = math.tanh %306 : vector<1x32xf32>
    %309 = arith.mulf %307, %308 : vector<1x32xf32>
    %cst_103 = arith.constant dense<0.000000e+00> : vector<1x128xf32>
    %310 = tpu.matmul %309, %10, %cst_103 {dimension_numbers = #tpu.dot_dimension_numbers<[1], [0], [0], [1], [0, 0, 1, 1], [], []>} : vector<1x32xf32>, vector<32x128xf32>, vector<1x128xf32> -> vector<1x128xf32>
    %311 = arith.addf %310, %11 : vector<1x128xf32>
    %312 = vector.extract_strided_slice %311 {offsets = [0, 0], sizes = [1, 32], strides = [1, 1]} : vector<1x128xf32> to vector<1x32xf32>
    %313 = vector.extract_strided_slice %311 {offsets = [0, 32], sizes = [1, 32], strides = [1, 1]} : vector<1x128xf32> to vector<1x32xf32>
    %314 = vector.extract_strided_slice %311 {offsets = [0, 64], sizes = [1, 32], strides = [1, 1]} : vector<1x128xf32> to vector<1x32xf32>
    %315 = vector.extract_strided_slice %311 {offsets = [0, 96], sizes = [1, 1], strides = [1, 1]} : vector<1x128xf32> to vector<1x1xf32>
    %316 = vector.extract_strided_slice %311 {offsets = [0, 97], sizes = [1, 1], strides = [1, 1]} : vector<1x128xf32> to vector<1x1xf32>
    %317 = vector.broadcast %316 : vector<1x1xf32> to vector<1x8xf32>
    %318 = arith.subf %317, %278 : vector<1x8xf32>
    %cst_104 = arith.constant 0.000000e+00 : f32
    %319 = vector.broadcast %cst_104 : f32 to vector<1x8xf32>
    %320 = arith.maximumf %318, %319 : vector<1x8xf32>
    %321 = arith.subf %275, %320 : vector<1x8xf32>
    %cst_105 = arith.constant 0.000000e+00 : f32
    %322 = vector.broadcast %cst_105 : f32 to vector<1x8xf32>
    %323 = arith.maximumf %321, %322 : vector<1x8xf32>
    %324 = vector.broadcast %288 : i32 to vector<1x8xi32>
    %325 = arith.cmpi eq, %17, %324 : vector<1x8xi32>
    %326 = vector.shape_cast %315 : vector<1x1xf32> to vector<1x1xf32>
    %327 = vector.broadcast %326 : vector<1x1xf32> to vector<1x8xf32>
    %328 = arith.select %325, %327, %323 : vector<1x8xi1>, vector<1x8xf32>
    %329 = arith.index_cast %288 : i32 to index
    %c0_106 = arith.constant 0 : index
    %330 = vector.load %arg12[%329, %c0_106] : memref<8x32xf32, #tpu.memory_space<vmem>>, vector<1x32xf32>
    tpu.vector_store %arg12[%329, %c0_106], %314 {strides = array<i32>} : memref<8x32xf32, #tpu.memory_space<vmem>>, vector<1x32xf32>,
    %cst_107 = arith.constant dense<0.000000e+00> : vector<1x8xf32>
    %331 = tpu.matmul %328, %16, %cst_107 {dimension_numbers = #tpu.dot_dimension_numbers<[1], [0], [0], [1], [0, 0, 1, 1], [], []>} : vector<1x8xf32>, vector<8x8xf32>, vector<1x8xf32> -> vector<1x8xf32>
    %cst_108 = arith.constant 1.000000e+00 : f32
    %332 = vector.broadcast %cst_108 : f32 to vector<1x8xf32>
    %333 = arith.subf %332, %331 : vector<1x8xf32>
    %cst_109 = arith.constant 0.000000e+00 : f32
    %334 = vector.broadcast %cst_109 : f32 to vector<1x8xf32>
    %335 = arith.maximumf %333, %334 : vector<1x8xf32>
    %336 = arith.minimumf %328, %335 : vector<1x8xf32>
    %c0_110 = arith.constant 0 : index
    %c0_111 = arith.constant 0 : index
    %337 = vector.load %arg12[%c0_110, %c0_111] : memref<8x32xf32, #tpu.memory_space<vmem>>, vector<8x32xf32>
    %cst_112 = arith.constant dense<0.000000e+00> : vector<1x32xf32>
    %338 = tpu.matmul %336, %337, %cst_112 {dimension_numbers = #tpu.dot_dimension_numbers<[1], [0], [0], [1], [0, 0, 1, 1], [], []>} : vector<1x8xf32>, vector<8x32xf32>, vector<1x32xf32> -> vector<1x32xf32>
    %339 = arith.index_cast %c5_i32 : i32 to index
    %c0_113 = arith.constant 0 : index
    %340 = vector.load %arg10[%339, %c0_113] : memref<8x32xf32, #tpu.memory_space<vmem>>, vector<1x32xf32>
    tpu.vector_store %arg10[%339, %c0_113], %313 {strides = array<i32>} : memref<8x32xf32, #tpu.memory_space<vmem>>, vector<1x32xf32>,
    %c6_i32 = arith.constant 6 : i32
    %c0_i32_114 = arith.constant 0 : i32
    %341 = arith.addi %c6_i32, %c0_i32_114 : i32
    %342 = arith.index_cast %c6_i32 : i32 to index
    %c0_115 = arith.constant 0 : index
    %343 = vector.load %arg14[%342, %c0_115] : memref<8x128xf32, #tpu.memory_space<vmem>>, vector<1x128xf32>
    %344 = tpu.concatenate %338, %312 in 1 : vector<1x32xf32>, vector<1x32xf32> -> vector<1x64xf32>
    %cst_116 = arith.constant dense<0.000000e+00> : vector<1x128xf32>
    %345 = tpu.matmul %344, %9, %cst_116 {dimension_numbers = #tpu.dot_dimension_numbers<[1], [0], [0], [1], [0, 0, 1, 1], [], []>} : vector<1x64xf32>, vector<64x128xf32>, vector<1x128xf32> -> vector<1x128xf32>
    %346 = arith.addf %343, %345 : vector<1x128xf32>
    %347 = vector.extract_strided_slice %346 {offsets = [0, 0], sizes = [1, 96], strides = [1, 1]} : vector<1x128xf32> to vector<1x96xf32>
    %348 = arith.negf %347 : vector<1x96xf32>
    %349 = math.exp %348 : vector<1x96xf32>
    %cst_117 = arith.constant 1.000000e+00 : f32
    %350 = vector.broadcast %cst_117 : f32 to vector<1x96xf32>
    %351 = arith.addf %350, %349 : vector<1x96xf32>
    %352 = arith.divf %350, %351 : vector<1x96xf32>
    %353 = vector.extract_strided_slice %346 {offsets = [0, 96], sizes = [1, 32], strides = [1, 1]} : vector<1x128xf32> to vector<1x32xf32>
    %354 = math.tanh %353 : vector<1x32xf32>
    %355 = vector.extract_strided_slice %352 {offsets = [0, 32], sizes = [1, 32], strides = [1, 1]} : vector<1x96xf32> to vector<1x32xf32>
    %356 = arith.mulf %355, %306 : vector<1x32xf32>
    %357 = vector.extract_strided_slice %352 {offsets = [0, 0], sizes = [1, 32], strides = [1, 1]} : vector<1x96xf32> to vector<1x32xf32>
    %358 = arith.mulf %357, %354 : vector<1x32xf32>
    %359 = arith.addf %356, %358 : vector<1x32xf32>
    %360 = vector.extract_strided_slice %352 {offsets = [0, 64], sizes = [1, 32], strides = [1, 1]} : vector<1x96xf32> to vector<1x32xf32>
    %361 = math.tanh %359 : vector<1x32xf32>
    %362 = arith.mulf %360, %361 : vector<1x32xf32>
    %cst_118 = arith.constant dense<0.000000e+00> : vector<1x128xf32>
    %363 = tpu.matmul %362, %10, %cst_118 {dimension_numbers = #tpu.dot_dimension_numbers<[1], [0], [0], [1], [0, 0, 1, 1], [], []>} : vector<1x32xf32>, vector<32x128xf32>, vector<1x128xf32> -> vector<1x128xf32>
    %364 = arith.addf %363, %11 : vector<1x128xf32>
    %365 = vector.extract_strided_slice %364 {offsets = [0, 0], sizes = [1, 32], strides = [1, 1]} : vector<1x128xf32> to vector<1x32xf32>
    %366 = vector.extract_strided_slice %364 {offsets = [0, 32], sizes = [1, 32], strides = [1, 1]} : vector<1x128xf32> to vector<1x32xf32>
    %367 = vector.extract_strided_slice %364 {offsets = [0, 64], sizes = [1, 32], strides = [1, 1]} : vector<1x128xf32> to vector<1x32xf32>
    %368 = vector.extract_strided_slice %364 {offsets = [0, 96], sizes = [1, 1], strides = [1, 1]} : vector<1x128xf32> to vector<1x1xf32>
    %369 = vector.extract_strided_slice %364 {offsets = [0, 97], sizes = [1, 1], strides = [1, 1]} : vector<1x128xf32> to vector<1x1xf32>
    %370 = vector.broadcast %369 : vector<1x1xf32> to vector<1x8xf32>
    %371 = arith.subf %370, %331 : vector<1x8xf32>
    %cst_119 = arith.constant 0.000000e+00 : f32
    %372 = vector.broadcast %cst_119 : f32 to vector<1x8xf32>
    %373 = arith.maximumf %371, %372 : vector<1x8xf32>
    %374 = arith.subf %328, %373 : vector<1x8xf32>
    %cst_120 = arith.constant 0.000000e+00 : f32
    %375 = vector.broadcast %cst_120 : f32 to vector<1x8xf32>
    %376 = arith.maximumf %374, %375 : vector<1x8xf32>
    %377 = vector.broadcast %341 : i32 to vector<1x8xi32>
    %378 = arith.cmpi eq, %17, %377 : vector<1x8xi32>
    %379 = vector.shape_cast %368 : vector<1x1xf32> to vector<1x1xf32>
    %380 = vector.broadcast %379 : vector<1x1xf32> to vector<1x8xf32>
    %381 = arith.select %378, %380, %376 : vector<1x8xi1>, vector<1x8xf32>
    %382 = arith.index_cast %341 : i32 to index
    %c0_121 = arith.constant 0 : index
    %383 = vector.load %arg12[%382, %c0_121] : memref<8x32xf32, #tpu.memory_space<vmem>>, vector<1x32xf32>
    tpu.vector_store %arg12[%382, %c0_121], %367 {strides = array<i32>} : memref<8x32xf32, #tpu.memory_space<vmem>>, vector<1x32xf32>,
    %cst_122 = arith.constant dense<0.000000e+00> : vector<1x8xf32>
    %384 = tpu.matmul %381, %16, %cst_122 {dimension_numbers = #tpu.dot_dimension_numbers<[1], [0], [0], [1], [0, 0, 1, 1], [], []>} : vector<1x8xf32>, vector<8x8xf32>, vector<1x8xf32> -> vector<1x8xf32>
    %cst_123 = arith.constant 1.000000e+00 : f32
    %385 = vector.broadcast %cst_123 : f32 to vector<1x8xf32>
    %386 = arith.subf %385, %384 : vector<1x8xf32>
    %cst_124 = arith.constant 0.000000e+00 : f32
    %387 = vector.broadcast %cst_124 : f32 to vector<1x8xf32>
    %388 = arith.maximumf %386, %387 : vector<1x8xf32>
    %389 = arith.minimumf %381, %388 : vector<1x8xf32>
    %c0_125 = arith.constant 0 : index
    %c0_126 = arith.constant 0 : index
    %390 = vector.load %arg12[%c0_125, %c0_126] : memref<8x32xf32, #tpu.memory_space<vmem>>, vector<8x32xf32>
    %cst_127 = arith.constant dense<0.000000e+00> : vector<1x32xf32>
    %391 = tpu.matmul %389, %390, %cst_127 {dimension_numbers = #tpu.dot_dimension_numbers<[1], [0], [0], [1], [0, 0, 1, 1], [], []>} : vector<1x8xf32>, vector<8x32xf32>, vector<1x32xf32> -> vector<1x32xf32>
    %392 = arith.index_cast %c6_i32 : i32 to index
    %c0_128 = arith.constant 0 : index
    %393 = vector.load %arg10[%392, %c0_128] : memref<8x32xf32, #tpu.memory_space<vmem>>, vector<1x32xf32>
    tpu.vector_store %arg10[%392, %c0_128], %366 {strides = array<i32>} : memref<8x32xf32, #tpu.memory_space<vmem>>, vector<1x32xf32>,
    %c7_i32 = arith.constant 7 : i32
    %c0_i32_129 = arith.constant 0 : i32
    %394 = arith.addi %c7_i32, %c0_i32_129 : i32
    %395 = arith.index_cast %c7_i32 : i32 to index
    %c0_130 = arith.constant 0 : index
    %396 = vector.load %arg14[%395, %c0_130] : memref<8x128xf32, #tpu.memory_space<vmem>>, vector<1x128xf32>
    %397 = tpu.concatenate %391, %365 in 1 : vector<1x32xf32>, vector<1x32xf32> -> vector<1x64xf32>
    %cst_131 = arith.constant dense<0.000000e+00> : vector<1x128xf32>
    %398 = tpu.matmul %397, %9, %cst_131 {dimension_numbers = #tpu.dot_dimension_numbers<[1], [0], [0], [1], [0, 0, 1, 1], [], []>} : vector<1x64xf32>, vector<64x128xf32>, vector<1x128xf32> -> vector<1x128xf32>
    %399 = arith.addf %396, %398 : vector<1x128xf32>
    %400 = vector.extract_strided_slice %399 {offsets = [0, 0], sizes = [1, 96], strides = [1, 1]} : vector<1x128xf32> to vector<1x96xf32>
    %401 = arith.negf %400 : vector<1x96xf32>
    %402 = math.exp %401 : vector<1x96xf32>
    %cst_132 = arith.constant 1.000000e+00 : f32
    %403 = vector.broadcast %cst_132 : f32 to vector<1x96xf32>
    %404 = arith.addf %403, %402 : vector<1x96xf32>
    %405 = arith.divf %403, %404 : vector<1x96xf32>
    %406 = vector.extract_strided_slice %399 {offsets = [0, 96], sizes = [1, 32], strides = [1, 1]} : vector<1x128xf32> to vector<1x32xf32>
    %407 = math.tanh %406 : vector<1x32xf32>
    %408 = vector.extract_strided_slice %405 {offsets = [0, 32], sizes = [1, 32], strides = [1, 1]} : vector<1x96xf32> to vector<1x32xf32>
    %409 = arith.mulf %408, %359 : vector<1x32xf32>
    %410 = vector.extract_strided_slice %405 {offsets = [0, 0], sizes = [1, 32], strides = [1, 1]} : vector<1x96xf32> to vector<1x32xf32>
    %411 = arith.mulf %410, %407 : vector<1x32xf32>
    %412 = arith.addf %409, %411 : vector<1x32xf32>
    %413 = vector.extract_strided_slice %405 {offsets = [0, 64], sizes = [1, 32], strides = [1, 1]} : vector<1x96xf32> to vector<1x32xf32>
    %414 = math.tanh %412 : vector<1x32xf32>
    %415 = arith.mulf %413, %414 : vector<1x32xf32>
    %cst_133 = arith.constant dense<0.000000e+00> : vector<1x128xf32>
    %416 = tpu.matmul %415, %10, %cst_133 {dimension_numbers = #tpu.dot_dimension_numbers<[1], [0], [0], [1], [0, 0, 1, 1], [], []>} : vector<1x32xf32>, vector<32x128xf32>, vector<1x128xf32> -> vector<1x128xf32>
    %417 = arith.addf %416, %11 : vector<1x128xf32>
    %418 = vector.extract_strided_slice %417 {offsets = [0, 0], sizes = [1, 32], strides = [1, 1]} : vector<1x128xf32> to vector<1x32xf32>
    %419 = vector.extract_strided_slice %417 {offsets = [0, 32], sizes = [1, 32], strides = [1, 1]} : vector<1x128xf32> to vector<1x32xf32>
    %420 = vector.extract_strided_slice %417 {offsets = [0, 64], sizes = [1, 32], strides = [1, 1]} : vector<1x128xf32> to vector<1x32xf32>
    %421 = vector.extract_strided_slice %417 {offsets = [0, 96], sizes = [1, 1], strides = [1, 1]} : vector<1x128xf32> to vector<1x1xf32>
    %422 = vector.extract_strided_slice %417 {offsets = [0, 97], sizes = [1, 1], strides = [1, 1]} : vector<1x128xf32> to vector<1x1xf32>
    %423 = vector.broadcast %422 : vector<1x1xf32> to vector<1x8xf32>
    %424 = arith.subf %423, %384 : vector<1x8xf32>
    %cst_134 = arith.constant 0.000000e+00 : f32
    %425 = vector.broadcast %cst_134 : f32 to vector<1x8xf32>
    %426 = arith.maximumf %424, %425 : vector<1x8xf32>
    %427 = arith.subf %381, %426 : vector<1x8xf32>
    %cst_135 = arith.constant 0.000000e+00 : f32
    %428 = vector.broadcast %cst_135 : f32 to vector<1x8xf32>
    %429 = arith.maximumf %427, %428 : vector<1x8xf32>
    %430 = vector.broadcast %394 : i32 to vector<1x8xi32>
    %431 = arith.cmpi eq, %17, %430 : vector<1x8xi32>
    %432 = vector.shape_cast %421 : vector<1x1xf32> to vector<1x1xf32>
    %433 = vector.broadcast %432 : vector<1x1xf32> to vector<1x8xf32>
    %434 = arith.select %431, %433, %429 : vector<1x8xi1>, vector<1x8xf32>
    %435 = arith.index_cast %394 : i32 to index
    %c0_136 = arith.constant 0 : index
    %436 = vector.load %arg12[%435, %c0_136] : memref<8x32xf32, #tpu.memory_space<vmem>>, vector<1x32xf32>
    tpu.vector_store %arg12[%435, %c0_136], %420 {strides = array<i32>} : memref<8x32xf32, #tpu.memory_space<vmem>>, vector<1x32xf32>,
    %cst_137 = arith.constant dense<0.000000e+00> : vector<1x8xf32>
    %437 = tpu.matmul %434, %16, %cst_137 {dimension_numbers = #tpu.dot_dimension_numbers<[1], [0], [0], [1], [0, 0, 1, 1], [], []>} : vector<1x8xf32>, vector<8x8xf32>, vector<1x8xf32> -> vector<1x8xf32>
    %cst_138 = arith.constant 1.000000e+00 : f32
    %438 = vector.broadcast %cst_138 : f32 to vector<1x8xf32>
    %439 = arith.subf %438, %437 : vector<1x8xf32>
    %cst_139 = arith.constant 0.000000e+00 : f32
    %440 = vector.broadcast %cst_139 : f32 to vector<1x8xf32>
    %441 = arith.maximumf %439, %440 : vector<1x8xf32>
    %442 = arith.minimumf %434, %441 : vector<1x8xf32>
    %c0_140 = arith.constant 0 : index
    %c0_141 = arith.constant 0 : index
    %443 = vector.load %arg12[%c0_140, %c0_141] : memref<8x32xf32, #tpu.memory_space<vmem>>, vector<8x32xf32>
    %cst_142 = arith.constant dense<0.000000e+00> : vector<1x32xf32>
    %444 = tpu.matmul %442, %443, %cst_142 {dimension_numbers = #tpu.dot_dimension_numbers<[1], [0], [0], [1], [0, 0, 1, 1], [], []>} : vector<1x8xf32>, vector<8x32xf32>, vector<1x32xf32> -> vector<1x32xf32>
    %445 = arith.index_cast %c7_i32 : i32 to index
    %c0_143 = arith.constant 0 : index
    %446 = vector.load %arg10[%445, %c0_143] : memref<8x32xf32, #tpu.memory_space<vmem>>, vector<1x32xf32>
    tpu.vector_store %arg10[%445, %c0_143], %419 {strides = array<i32>} : memref<8x32xf32, #tpu.memory_space<vmem>>, vector<1x32xf32>,
    %c8_i32 = arith.constant 8 : i32
    %c0_144 = arith.constant 0 : index
    %c0_145 = arith.constant 0 : index
    %447 = vector.load %arg11[%c0_144, %c0_145] : memref<3x32xf32, #tpu.memory_space<vmem>>, vector<1x32xf32>
    tpu.vector_store %arg11[%c0_144, %c0_145], %418 {strides = array<i32>} : memref<3x32xf32, #tpu.memory_space<vmem>>, vector<1x32xf32>,
    %c1_146 = arith.constant 1 : index
    %c0_147 = arith.constant 0 : index
    %448 = vector.load %arg11[%c1_146, %c0_147] : memref<3x32xf32, #tpu.memory_space<vmem>>, vector<1x32xf32>
    tpu.vector_store %arg11[%c1_146, %c0_147], %412 {strides = array<i32>} : memref<3x32xf32, #tpu.memory_space<vmem>>, vector<1x32xf32>,
    %c2_148 = arith.constant 2 : index
    %c0_149 = arith.constant 0 : index
    %449 = vector.load %arg11[%c2_148, %c0_149] : memref<3x32xf32, #tpu.memory_space<vmem>>, vector<1x32xf32>
    tpu.vector_store %arg11[%c2_148, %c0_149], %444 {strides = array<i32>} : memref<3x32xf32, #tpu.memory_space<vmem>>, vector<1x32xf32>,
    %c0_150 = arith.constant 0 : index
    %c0_151 = arith.constant 0 : index
    %450 = vector.load %arg13[%c0_150, %c0_151] : memref<1x8xf32, #tpu.memory_space<vmem>>, vector<1x8xf32>
    tpu.vector_store %arg13[%c0_150, %c0_151], %434 {strides = array<i32>} : memref<1x8xf32, #tpu.memory_space<vmem>>, vector<1x8xf32>,
    return
  }
  func.func @transform_0(%arg0: i32) -> (i32, i32) {
    %c0_i32 = arith.constant 0 : i32
    %c0_i32_0 = arith.constant 0 : i32
    %c0_i32_1 = arith.constant 0 : i32
    return %c0_i32, %c0_i32_0 : i32, i32
  }
  func.func @transform_1(%arg0: i32) -> (i32, i32) {
    %c0_i32 = arith.constant 0 : i32
    %c0_i32_0 = arith.constant 0 : i32
    %c0_i32_1 = arith.constant 0 : i32
    return %c0_i32, %c0_i32_0 : i32, i32
  }
  func.func @transform_2(%arg0: i32) -> (i32, i32) {
    %c0_i32 = arith.constant 0 : i32
    %c0_i32_0 = arith.constant 0 : i32
    %c0_i32_1 = arith.constant 0 : i32
    return %c0_i32, %c0_i32_0 : i32, i32
  }
  func.func @transform_3(%arg0: i32) -> (i32, i32) {
    %c0_i32 = arith.constant 0 : i32
    %c0_i32_0 = arith.constant 0 : i32
    %c0_i32_1 = arith.constant 0 : i32
    return %c0_i32, %c0_i32_0 : i32, i32
  }
  func.func @transform_4(%arg0: i32) -> (i32, i32) {
    %c0_i32 = arith.constant 0 : i32
    %c0_i32_0 = arith.constant 0 : i32
    %c0_i32_1 = arith.constant 0 : i32
    return %c0_i32, %c0_i32_0 : i32, i32
  }
  func.func @transform_5(%arg0: i32) -> (i32, i32) {
    %c0_i32 = arith.constant 0 : i32
    %c0_i32_0 = arith.constant 0 : i32
    %c0_i32_1 = arith.constant 0 : i32
    return %c0_i32, %c0_i32_0 : i32, i32
  }
  func.func @transform_6(%arg0: i32) -> (i32, i32) {
    %c0_i32 = arith.constant 0 : i32
    %c0_i32_0 = arith.constant 0 : i32
    %c0_i32_1 = arith.constant 0 : i32
    return %c0_i32, %c0_i32_0 : i32, i32
  }
  func.func @transform_7(%arg0: i32) -> (i32, i32) {
    %c0_i32 = arith.constant 0 : i32
    %c0_i32_0 = arith.constant 0 : i32
    %c0_i32_1 = arith.constant 0 : i32
    return %c0_i32, %c0_i32_0 : i32, i32
  }
  func.func @transform_8(%arg0: i32) -> (i32, i32) {
    %c0_i32 = arith.constant 0 : i32
    %c0_i32_0 = arith.constant 0 : i32
    %c0_i32_1 = arith.constant 0 : i32
    return %c0_i32, %c0_i32_0 : i32, i32
  }
  func.func @transform_9(%arg0: i32) -> (i32, i32) {
    %c0_i32 = arith.constant 0 : i32
    %c0_i32_0 = arith.constant 0 : i32
    %c0_i32_1 = arith.constant 0 : i32
    return %c0_i32, %c0_i32_0 : i32, i32
  }
  func.func @transform_10(%arg0: i32) -> (i32, i32) {
    %c0_i32 = arith.constant 0 : i32
    %c0_i32_0 = arith.constant 0 : i32
    %c0_i32_1 = arith.constant 0 : i32
    return %c0_i32, %c0_i32_0 : i32, i32
  }
  func.func @transform_11(%arg0: i32) -> (i32, i32) {
    %c0_i32 = arith.constant 0 : i32
    %c0_i32_0 = arith.constant 0 : i32
    %c0_i32_1 = arith.constant 0 : i32
    return %c0_i32, %c0_i32_0 : i32, i32
  }
  func.func @transform_12(%arg0: i32) -> (i32, i32) {
    %c0_i32 = arith.constant 0 : i32
    %c0_i32_0 = arith.constant 0 : i32
    %c0_i32_1 = arith.constant 0 : i32
    return %c0_i32, %c0_i32_0 : i32, i32
  }
}

</mosaic_0001>

<bundles_post_ra>
// kernel: tpu_custom_call.1
= control target key start
LH: loop header
LB: loop body
LE: loop exit
PB: predicated region body
PF: predicated region fallthrough
CT: control target
= control target key end

     0   :  { %18 = vsyncpa [#allocation4], 0  ;;  %s4860_s0 = inlined_call_operand.hbm [shape: f32[8,16], index: 0, kind: input, shape index: {}]   ;;  %s4861_s1 = inlined_call_operand.hbm [shape: f32[16,128], index: 1, kind: input, shape index: {}]   ;;  %s4862_s2 = inlined_call_operand.hbm [shape: f32[64,128], index: 2, kind: input, shape index: {}]   ;;  %s4863_s3 = inlined_call_operand.vmem [shape: f32[1,128], index: 3, kind: input, shape index: {}]   ;;  %s4864_s4 = inlined_call_operand.hbm [shape: f32[32,128], index: 4, kind: input, shape index: {}]   ;;  %s4865_s5 = inlined_call_operand.vmem [shape: f32[1,128], index: 5, kind: input, shape index: {}]   ;;  %s4866_s6 = inlined_call_operand.vmem [shape: f32[3,32], index: 6, kind: input, shape index: {}]   ;;  %s4867_s7 = inlined_call_operand.vmem [shape: f32[8,32], index: 7, kind: input, shape index: {}]   ;;  %s4868_s8 = inlined_call_operand.vmem [shape: f32[1,8], index: 8, kind: input, shape index: {}]   ;;  %s4869_s9 = inlined_call_operand.hbm [shape: f32[8,32], index: 9, kind: output, shape index: {0}]   ;;  %s4870_s10 = inlined_call_operand.hbm [shape: f32[3,32], index: 10, kind: output, shape index: {1}]   ;;  %s4871_s11 = inlined_call_operand.hbm [shape: f32[8,32], index: 11, kind: output, shape index: {2}]   ;;  %s4872_s12 = inlined_call_operand.hbm [shape: f32[1,8], index: 12, kind: output, shape index: {3}]  }
   0x1   :  { %19 = vsyncpa [#allocation7], 0 }
   0x2   :  { %20 = vsyncpa [#allocation10], 0 }
   0x3   :  { %21 = vsyncpa [#allocation5], 0 }
   0x4   :  { %22 = vsyncpa [#allocation13], 0 }
   0x5   :  { %23 = vsyncpa [#allocation16], 0  ;;  %s4129_s21 = smov [#allocation6]   ;;  %s3941_s25 = scalar_lea.hbm %s4861_s1, 256 }
   0x6   :  { %s39_s22 = sshll.u32 %s4129_s21, 4  ;;  %p3942_p0 = scmp.ne.s32.totalorder %s4861_s1, %s3941_s25  ;;  %s40_s22 = int_to_ptr.vmem [resolvable:$true] %s39_s22 }
   0x7   :  { %p3945_p1 = scmp.lt.u32.totalorder %s3941_s25, %s4861_s1 }
   0x9   :  { %p3947_p2 = pnand %p3945_p1, %p3942_p0 }
   0xb   :  { %3950 = shalt.err (!%p3947_p2)
}
   0xc   :  { %s3951_s30 = scalar_lea.vmem %s40_s22, 256  ;;  %p3956_p4 = scmp.lt.s32.totalorder %s40_s22, %s40_s22 }
   0xd   :  { %p3952_p3 = scmp.ne.s32.totalorder %s40_s22, %s3951_s30  ;;  %p3957_p5 = scmp.lt.s32.totalorder %s3951_s30, %s3951_s30 }
   0xf   :  { %p3958_p6 = por %p3957_p5, %p3956_p4 }
  0x11   :  { %p3959_p7 = pnand %p3958_p6, %p3952_p3 }
  0x13   :  { %3962 = shalt.err (!%p3959_p7)
}
  0x14   :  { %s4130_s13 = smov 128   ;;  %s4131_s14 = smov 8  }
  0x15   :  { %45 = dma.hbm_to_vmem [thread:$0]  %s4861_s1, 256, %s40_s22, [#allocation7], %s4130_s13, %s4130_s13, %s4131_s14  }
  0x16   :  { %s4132_s17 = smov [#allocation3]   ;;  %s4133_s19 = smov [#allocation8]  }
  0x17   :  { %s30_s18 = sshll.u32 %s4132_s17, 4  ;;  %s51_s20 = sshll.u32 %s4133_s19, 4  ;;  %s31_s18 = int_to_ptr.vmem [resolvable:$true] %s30_s18  ;;  %s52_s20 = int_to_ptr.vmem [resolvable:$true] %s51_s20 }
  0x18   :  { %s3963_s24 = scalar_lea.hbm %s4860_s0, 128 }
  0x19   :  { %p3964_p8 = scmp.ne.s32.totalorder %s4860_s0, %s3963_s24  ;;  %p3967_p9 = scmp.lt.u32.totalorder %s3963_s24, %s4860_s0 }
  0x1b   :  { %p3969_p10 = pnand %p3967_p9, %p3964_p8 }
  0x1d   :  { %3972 = shalt.err (!%p3969_p10)
}
  0x1e   :  { %s3973_s1 = scalar_lea.vmem %s31_s18, 128  ;;  %p3978_p12 = scmp.lt.s32.totalorder %s31_s18, %s31_s18 }
  0x1f   :  { %p3974_p11 = scmp.ne.s32.totalorder %s31_s18, %s3973_s1  ;;  %p3979_p13 = scmp.lt.s32.totalorder %s3973_s1, %s3973_s1 }
  0x21   :  { %p3980_p0 = por %p3979_p13, %p3978_p12 }
  0x23   :  { %p3981_p1 = pnand %p3980_p0, %p3974_p11 }
  0x25   :  { %3984 = shalt.err (!%p3981_p1)
}
  0x26   :  { %33 = dma.hbm_to_vmem [thread:$0]  %s4860_s0, 128, %s31_s18, [#allocation4]  }
  0x27   :  { %s3985_s16 = scalar_lea.hbm %s4862_s2, 1024 }
  0x28   :  { %p3986_p2 = scmp.ne.s32.totalorder %s4862_s2, %s3985_s16  ;;  %p3989_p3 = scmp.lt.u32.totalorder %s3985_s16, %s4862_s2 }
  0x2a   :  { %p3991_p4 = pnand %p3989_p3, %p3986_p2 }
  0x2c   :  { %3994 = shalt.err (!%p3991_p4)
}
  0x2d   :  { %s3995_s24 = scalar_lea.vmem %s52_s20, 1024  ;;  %p4000_p6 = scmp.lt.s32.totalorder %s52_s20, %s52_s20 }
  0x2e   :  { %p3996_p5 = scmp.ne.s32.totalorder %s52_s20, %s3995_s24  ;;  %p4001_p7 = scmp.lt.s32.totalorder %s3995_s24, %s3995_s24 }
  0x30   :  { %p4002_p8 = por %p4001_p7, %p4000_p6 }
  0x32   :  { %p4003_p9 = pnand %p4002_p8, %p3996_p5 }
  0x34   :  { %4006 = shalt.err (!%p4003_p9)
}
  0x35   :  { %57 = dma.hbm_to_vmem [thread:$0]  %s4862_s2, 1024, %s52_s20, [#allocation7], %s4130_s13, %s4130_s13, %s4131_s14  }
  0x36   :  { %s4134_s25 = smov [#allocation9]   ;;  %s4007_s1 = scalar_lea.hbm %s4864_s4, 512 }
  0x37   :  { %s65_s26 = sshll.u32 %s4134_s25, 4  ;;  %p4008_p10 = scmp.ne.s32.totalorder %s4864_s4, %s4007_s1  ;;  %s66_s26 = int_to_ptr.vmem [resolvable:$true] %s65_s26 }
  0x38   :  { %p4011_p11 = scmp.lt.u32.totalorder %s4007_s1, %s4864_s4 }
  0x3a   :  { %p4013_p12 = pnand %p4011_p11, %p4008_p10 }
  0x3c   :  { %4016 = shalt.err (!%p4013_p12)
}
  0x3d   :  { %s4017_s16 = scalar_lea.vmem %s66_s26, 512  ;;  %p4022_p0 = scmp.lt.s32.totalorder %s66_s26, %s66_s26 }
  0x3e   :  { %p4018_p13 = scmp.ne.s32.totalorder %s66_s26, %s4017_s16  ;;  %p4023_p1 = scmp.lt.s32.totalorder %s4017_s16, %s4017_s16 }
  0x40   :  { %p4024_p2 = por %p4023_p1, %p4022_p0 }
  0x42   :  { %p4025_p3 = pnand %p4024_p2, %p4018_p13 }
  0x44   :  { %4028 = shalt.err (!%p4025_p3)
}
  0x45   :  { %71 = dma.hbm_to_vmem [thread:$0]  %s4864_s4, 512, %s66_s26, [#allocation10], %s4130_s13, %s4130_s13, %s4131_s14  }
  0x46   :  { %4117 = dma.done.wait [#allocation4], 128  }
  0x47   :  { %4118 = vsyncadd [#allocation4], 4294967168 }
  0x48   :  { %4119 = dma.done.wait [#allocation7], 1280  }
  0x49   :  { %4120 = vsyncadd [#allocation7], 4294966016 }
  0x4a   :  { %4121 = dma.done.wait [#allocation10], 512  }
  0x4b   :  { %4122 = vsyncadd [#allocation10], 4294966784  ;;  %v193_v0 = vlaneseq  ;;  %v4135_v1 = vmov 0.0   ;;  %vm4136_vm0 = vmmov 0   ;;  %v4137_v4 = vmov 0.0|0.0   ;;  %v180_v9 = vld [vmem:[#allocation8] sm:$0xff] }
  0x4c   :  { %3369 = vmatprep.subr.mxu1 %v4135_v1  ;;  %3371 = vmatprep.mubr.msk.f32.mxu1 %vm4136_vm0, %v4135_v1  ;;  %v4138_v6 = vmov 1.0   ;;  %vm204_vm2 = vcmask 64512   ;;  %v200_v7 = vld [vmem:[%s4866_s6] sm:$0x1]  ;;  %s4139_s19 = smov 32   ;;  %v181_v10 = vld [vmem:[#allocation8 + $0x8] sm:$0xff] }
  0x4d   :  { %v194_v2 = vshrl.u32 %v193_v0, 7  ;;  %v4273_v3 = vand.u32 127, %v193_v0  ;;  %3694 = vmatprep.subr.bf16.mxu0 %v4137_v4  ;;  %3366 = vmatprep.mubr.msk.f32.mxu0 %vm4136_vm0, %v4135_v1  ;;  %v4293_v8 = vld [vmem:[%s4868_s8] sm:$0x1]  ;;  %v96_v11 = vld [vmem:[#allocation6] sm:$0xff]  ;;  %v97_v12 = vld [vmem:[#allocation6 + $0x8] sm:$0xff]  ;;  %v4298_v13 = vpack.c.bf16 %v181_v10, %v180_v9 }
  0x4e   :  { %280 = vrot.lane.b32.xlu0 %v200_v7, %s4139_s19  ;;  %v3695_v14 = vpack.c.bf16 %v97_v12, %v96_v11  ;;  %v182_v15 = vld [vmem:[#allocation8 + $0x10] sm:$0xff]  ;;  %v183_v16 = vld [vmem:[#allocation8 + $0x18] sm:$0xff]  ;;  %v95_v17 = vld [vmem:[#allocation3] sm:$0xff]  ;;  %vm105_vm3 = vcmask 130048   ;;  %vm93_vm4 = vcmask 261120   ;;  %vm284_vm5 = vcmask 523264  }
  0x4f   :  { %vm4279_vm1 = vcmp.gt.s32.totalorder %v194_v2, %v4273_v3  ;;  %v4303_v18 = vpack.c.bf16 %v183_v16, %v182_v15  ;;  %v201_v19 = vld [vmem:[%s4866_s6 + $0x1] sm:$0x1]  ;;  %v185_v21 = vld [vmem:[#allocation8 + $0x28] sm:$0xff]  ;;  %v186_v23 = vld [vmem:[#allocation8 + $0x30] sm:$0xff]  ;;  %v4141_v60 = vmov 96   ;;  %v4142_v61 = vmov 97  }
  0x50   :  { %3370 = vmatpush3.msk.msra.mxu1 %vm4279_vm1, %v4138_v6  ;;  %3696 = vmatpush3.bf16.msra.mxu0 %v3695_v14  ;;  %v184_v20 = vld [vmem:[#allocation8 + $0x20] sm:$0xff]  ;;  %v187_v24 = vld [vmem:[#allocation8 + $0x38] sm:$0xff]  ;;  %v189_v51 = vld [vmem:[#allocation9 + $0x8] sm:$0xff]  ;;  %vm480_vm6 = vcmask 253952   ;;  %vm471_vm7 = vcmp.eq.s32.totalorder %v4273_v3, 0  ;;  %vm823_vm8 = vcmp.eq.s32.totalorder %v4273_v3, 1 }
  0x51   :  { %3697 = vmatprep.subr.bf16.mxu1 %v4137_v4  ;;  %3372 = vmatmul.mubr.msk.f32.vlgmr.msra.gmra.mrb[0].mxu1 %vm204_vm2, %v4293_v8  ;;  %v4312_v22 = vpack.c.bf16 %v185_v21, %v184_v20  ;;  %v4318_v25 = vpack.c.bf16 %v187_v24, %v186_v23  ;;  %v202_v26 = vld [vmem:[%s4866_s6 + $0x2] sm:$0x1]  ;;  %v3160_v31 = vld [vmem:[%s4863_s3] ss:$0 sm:$0xff]  ;;  %v190_v52 = vld [vmem:[#allocation9 + $0x10] sm:$0xff]  ;;  %s4140_s3 = smov 64  }
  0x52   :  { %3390 = vmatprep.mubr.msk.f32.mxu1 %vm4136_vm0, %v4135_v1  ;;  %3699 = vmatpush3.bf16.msra.mxu1 %v4298_v13  ;;  %v188_v50 = vld [vmem:[#allocation9] sm:$0xff]  ;;  %v191_v54 = vld [vmem:[#allocation9 + $0x18] sm:$0xff]  ;;  %vm1174_vm9 = vcmp.eq.s32.totalorder %v4273_v3, 2  ;;  %vm1525_vm10 = vcmp.eq.s32.totalorder %v4273_v3, 3  ;;  %vm1876_vm11 = vcmp.eq.s32.totalorder %v4273_v3, 4  ;;  %vm2227_vm12 = vcmp.eq.s32.totalorder %v4273_v3, 5 }
  0x53   :  { %3700 = vmatprep.subr.bf16.mxu1 %v4137_v4  ;;  %367 = vrot.lane.b32.xlu1 %v201_v19, %s4139_s19  ;;  %v4348_v53 = vpack.c.bf16 %v189_v51, %v188_v50  ;;  %v4351_v55 = vpack.c.bf16 %v191_v54, %v190_v52  ;;  %v4370_v62 = vld [vmem:[%s4865_s5] sm:$0x1]  ;;  %vm2578_vm13 = vcmp.eq.s32.totalorder %v4273_v3, 6  ;;  %s4143_s1 = smov 96   ;;  %vm2929_vm14 = vcmp.eq.s32.totalorder %v4273_v3, 7 }
  0x54   :  { %3709 = vmatprep.subr.bf16.mxu0 %v4137_v4  ;;  %3367 = vmatmul.mubr.msk.f32.vlgmr.msra.gmra.mrb[0].mxu0 %vm105_vm3, %v95_v17  ;;  %v92_v7 = vld [vmem:[%s4867_s7] sm:$0xff]  ;;  %vm3100_vm15 = vcmask 57344  }
  0x55   :  { %3401 = vmatprep.mubr.msk.f32.mxu0 %vm4136_vm0, %v4135_v1  ;;  %3711 = vmatpush3.bf16.msra.mxu0 %v4348_v53  ;;  %94 = vst.msk [vmem:[#allocation14] sm:$0xff] %vm93_vm4, %v92_v7 }
  0x56   :  { %3702 = vmatpush3.bf16.msra.mxu1 %v4303_v18  ;;  %3712 = vmatprep.subr.bf16.mxu0 %v4137_v4 }
  0x57   :  { %3703 = vmatprep.subr.bf16.mxu1 %v4137_v4  ;;  %3861 = vset.pattern.permute.xlu1 %v4141_v60 }
  0x58   :  { %3860 = vset.pattern.permute.xlu0 %v4142_v61 }
  0x59   :  { %3714 = vmatpush3.bf16.msra.mxu0 %v4351_v55 }
  0x5a   :  { %3705 = vmatpush3.bf16.msra.mxu1 %v4312_v22  ;;  %3404 = vmatprep.subr.mxu0 %v4135_v1 }
  0x5b   :  { %3706 = vmatprep.subr.bf16.mxu1 %v4137_v4 }
  0x5e   :  { %3708 = vmatpush3.bf16.msra.mxu1 %v4318_v25 }
  0x5f   :  { %3715 = vmatprep.subr.bf16.mxu1 %v4137_v4 }
  0xc0   :  { %v281_v27 = vpop.permute.xlu0 %280 }
  0xc1   :  { %v283_v28 = vsel %vm93_vm4, %v202_v26, %v281_v27 }
  0xc2   :  { %3391 = vmatmul.mubr.msk.f32.vlgmr.msra.gmra.mrb[2].mxu1 %vm284_vm5, %v283_v28 }
  0xc3   :  { %3717 = vmatpush3.bf16.msra.mxu1 %v4298_v13  ;;  %3430 = vmatprep.mubr.msk.f32.mxu1 %vm4136_vm0, %v4135_v1 }
  0xc4   :  { %3718 = vmatprep.subr.bf16.mxu1 %v4137_v4 }
  0xc5   :  { %v368_v46 = vpop.permute.xlu1 %367 }
  0xc7   :  { %3720 = vmatpush3.bf16.msra.mxu1 %v4303_v18 }
  0xc8   :  { %3721 = vmatprep.subr.bf16.mxu1 %v4137_v4 }
  0xcb   :  { %3723 = vmatpush3.bf16.msra.mxu1 %v4312_v22 }
  0xcc   :  { %3724 = vmatprep.subr.bf16.mxu1 %v4137_v4 }
  0xcf   :  { %3726 = vmatpush3.bf16.msra.mxu1 %v4318_v25 }
  0xd0   :  { %3733 = vmatprep.subr.bf16.mxu1 %v4137_v4 }
 0x124   :  { %v4338_v29 = vpop.f32.mrb[0].mxu1 }
 0x125   :  { %v3373_v30 = vpop.f32.mrb[1].mxu1 }
 0x127   :  { %v175_v32 = vpop.f32.mrb[0].mxu0 }
 0x128   :  { %v176_v33 = vadd.f32 %v3160_v31, %v175_v32  ;;  %v3368_v34 = vpop.f32.mrb[1].mxu0 }
 0x12a   :  { %179 = vst [vmem:[#allocation2] sm:$0xff] %v176_v33 }
 0x131   :  { %v278_v35 = vld [vmem:[#allocation2] sm:$0x1]  ;;  %v636_v30 = vld [vmem:[#allocation2 + $0x1] sm:$0x1] }
 0x195   :  { %v354_v36 = vpop.f32.mrb[2].mxu1 }
 0x196   :  { %v358_v37 = vadd.f32 %v354_v36, %v278_v35  ;;  %v3392_v38 = vpop.f32.mrb[3].mxu1 }
 0x198   :  { %3876 = vtanh.f32 %v358_v37  ;;  %v3166_v40 = vmul.f32 -1.442695, %v358_v37 }
 0x19a   :  { %3878 = vpow2.f32 %v3166_v40 }
 0x1a2   :  { %v3877_v39 = vpop.eup %3876 }
 0x1a3   :  { %372 = vrot.lane.b32.xlu0 %v3877_v39, %s4139_s19 }
 0x1a4   :  { %v3879_v41 = vpop.eup %3878 }
 0x1a5   :  { %v362_v42 = vadd.f32 1.0, %v3879_v41 }
 0x1a7   :  { %3880 = vrcp.f32 %v362_v42 }
 0x1b1   :  { %v3881_v43 = vpop.eup %3880 }
 0x1b2   :  { %v370_v47 = vmul.f32 %v3881_v43, %v368_v46 }
 0x215   :  { %v373_v44 = vpop.permute.xlu0 %372 }
 0x216   :  { %v375_v45 = vmul.f32 %v3881_v43, %v373_v44 }
 0x218   :  { %377 = vrot.lane.b32.xlu1 %v375_v45, %s4139_s19 }
 0x28a   :  { %v378_v48 = vpop.permute.xlu1 %377 }
 0x28b   :  { %v4345_v49 = vadd.f32 %v378_v48, %v370_v47 }
 0x28d   :  { %3882 = vtanh.f32 %v4345_v49 }
 0x297   :  { %v3883_v56 = vpop.eup %3882 }
 0x298   :  { %383 = vrot.lane.b32.xlu0 %v3883_v56, %s4139_s19 }
 0x30a   :  { %v384_v57 = vpop.permute.xlu0 %383 }
 0x30b   :  { %v386_v58 = vmul.f32 %v3881_v43, %v384_v57 }
 0x30d   :  { %388 = vrot.lane.b32.xlu1 %v386_v58, %s4140_s3 }
 0x37f   :  { %v389_v59 = vpop.permute.xlu1 %388 }
 0x380   :  { %3402 = vmatmul.mubr.msk.f32.vlgmr.msra.gmra.mrb[2].mxu0 %vm93_vm4, %v389_v59 }
 0x381   :  { %3405 = vmatpush3.msk.msra.mxu0 %vm4279_vm1, %v4138_v6  ;;  %3406 = vmatprep.mubr.msk.f32.mxu0 %vm4136_vm0, %v4135_v1 }
 0x382   :  { %3409 = vmatprep.subr.mxu0 %v4135_v1 }
 0x453   :  { %v458_v63 = vpop.f32.mrb[2].mxu0 }
 0x454   :  { %v4373_v0 = vadd.f32 %v458_v63, %v4370_v62  ;;  %v3403_v2 = vpop.f32.mrb[3].mxu0 }
 0x456   :  { %473 = vperm.xlu1 %3861, %v4373_v0   ;;  %464 = vperm.xlu0 %3860, %v4373_v0  }
 0x45a   :  { %477 = vrot.lane.b32.xlu1 %v4373_v0, %s4140_s3  ;;  %637 = vrot.lane.b32.xlu0 %v4373_v0, %s4139_s19 }
 0x45b   :  { %3862 = vset.pattern.permute.xlu1 %v4142_v61  ;;  %3863 = vset.pattern.permute.xlu0 %v4141_v60 }
 0x4d5   :  { %v474_v9 = vpop.permute.xlu1 %473  ;;  %v465_v10 = vpop.permute.xlu0 %464 }
 0x4d6   :  { %v467_v11 = vsub.f32 %v465_v10, %v4338_v29 }
 0x4d8   :  { %v468_v12 = vmax.f32 %v467_v11, 0.0 }
 0x4d9   :  { %v478_v14 = vpop.permute.xlu1 %477  ;;  %v638_v26 = vpop.permute.xlu0 %637 }
 0x4da   :  { %v469_v15 = vsub.f32 %v4293_v8, %v468_v12  ;;  %481 = vst.msk [vmem:[#allocation14] sm:$0x1] %vm480_vm6, %v478_v14 }
 0x4dc   :  { %v470_v16 = vmax.f32 %v469_v15, 0.0 }
 0x4de   :  { %v4391_v17 = vsel %vm471_vm7, %v474_v9, %v470_v16 }
 0x4df   :  { %3407 = vmatmul.mubr.msk.f32.vlgmr.msra.gmra.mrb[4].mxu0 %vm204_vm2, %v4391_v17 }
 0x4e0   :  { %3411 = vmatprep.mubr.msk.f32.mxu0 %vm4136_vm0, %v4135_v1 }
 0x4e1   :  { %v558_v19 = vld [vmem:[#allocation14] sm:$0xff] }
 0x4e2   :  { %3410 = vmatpush3.msra.mxu0 %v558_v19  ;;  %v987_v19 = vld [vmem:[#allocation2 + $0x2] sm:$0x1] }
 0x4e3   :  { %3727 = vmatprep.subr.bf16.mxu0 %v4137_v4 }
 0x5b2   :  { %v4398_v20 = vpop.f32.mrb[4].mxu0 }
 0x5b3   :  { %v555_v8 = vsub.f32 1.0, %v4398_v20  ;;  %v3408_v21 = vpop.f32.mrb[5].mxu0 }
 0x5b5   :  { %v556_v23 = vmax.f32 %v555_v8, 0.0 }
 0x5b7   :  { %v557_v24 = vmin.f32 %v4391_v17, %v556_v23 }
 0x5b9   :  { %3412 = vmatmul.mubr.msk.f32.vlgmr.msra.gmra.mrb[6].mxu0 %vm204_vm2, %v557_v24 }
 0x5ba   :  { %3729 = vmatpush3.bf16.msra.mxu0 %v4348_v53  ;;  %3441 = vmatprep.mubr.msk.f32.mxu0 %vm4136_vm0, %v4135_v1 }
 0x5bb   :  { %3730 = vmatprep.subr.bf16.mxu0 %v4137_v4 }
 0x5be   :  { %3732 = vmatpush3.bf16.msra.mxu0 %v4351_v55 }
 0x5bf   :  { %3444 = vmatprep.subr.mxu0 %v4135_v1 }
 0x68c   :  { %v628_v27 = vpop.f32.mrb[6].mxu0 }
 0x68d   :  { %v640_v28 = vsel %vm93_vm4, %v628_v27, %v638_v26  ;;  %v3413_v29 = vpop.f32.mrb[7].mxu0 }
 0x68e   :  { %3431 = vmatmul.mubr.msk.f32.vlgmr.msra.gmra.mrb[4].mxu1 %vm284_vm5, %v640_v28 }
 0x68f   :  { %3735 = vmatpush3.bf16.msra.mxu1 %v4298_v13  ;;  %3470 = vmatprep.mubr.msk.f32.mxu1 %vm4136_vm0, %v4135_v1 }
 0x690   :  { %3736 = vmatprep.subr.bf16.mxu1 %v4137_v4 }
 0x693   :  { %3738 = vmatpush3.bf16.msra.mxu1 %v4303_v18 }
 0x694   :  { %3739 = vmatprep.subr.bf16.mxu1 %v4137_v4 }
 0x697   :  { %3741 = vmatpush3.bf16.msra.mxu1 %v4312_v22 }
 0x698   :  { %3742 = vmatprep.subr.bf16.mxu1 %v4137_v4 }
 0x69b   :  { %3744 = vmatpush3.bf16.msra.mxu1 %v4318_v25 }
 0x69c   :  { %3751 = vmatprep.subr.bf16.mxu1 %v4137_v4 }
 0x761   :  { %v710_v31 = vpop.f32.mrb[4].mxu1 }
 0x762   :  { %v714_v32 = vadd.f32 %v710_v31, %v636_v30  ;;  %v3432_v33 = vpop.f32.mrb[5].mxu1 }
 0x764   :  { %3884 = vtanh.f32 %v714_v32  ;;  %v3172_v35 = vmul.f32 -1.442695, %v714_v32 }
 0x766   :  { %3886 = vpow2.f32 %v3172_v35 }
 0x76e   :  { %v3885_v34 = vpop.eup %3884 }
 0x76f   :  { %724 = vrot.lane.b32.xlu1 %v3885_v34, %s4139_s19 }
 0x770   :  { %v3887_v36 = vpop.eup %3886 }
 0x771   :  { %v718_v37 = vadd.f32 1.0, %v3887_v36 }
 0x773   :  { %3888 = vrcp.f32 %v718_v37 }
 0x77d   :  { %v3889_v38 = vpop.eup %3888 }
 0x77e   :  { %v722_v41 = vmul.f32 %v3889_v38, %v4345_v49 }
 0x7e1   :  { %v725_v39 = vpop.permute.xlu1 %724 }
 0x7e2   :  { %v727_v40 = vmul.f32 %v3889_v38, %v725_v39 }
 0x7e4   :  { %729 = vrot.lane.b32.xlu0 %v727_v40, %s4139_s19 }
 0x856   :  { %v730_v42 = vpop.permute.xlu0 %729 }
 0x857   :  { %v4424_v43 = vadd.f32 %v730_v42, %v722_v41 }
 0x859   :  { %3890 = vtanh.f32 %v4424_v43 }
 0x863   :  { %v3891_v44 = vpop.eup %3890 }
 0x864   :  { %735 = vrot.lane.b32.xlu1 %v3891_v44, %s4139_s19 }
 0x8d6   :  { %v736_v45 = vpop.permute.xlu1 %735 }
 0x8d7   :  { %v738_v46 = vmul.f32 %v3889_v38, %v736_v45 }
 0x8d9   :  { %740 = vrot.lane.b32.xlu0 %v738_v46, %s4140_s3 }
 0x94b   :  { %v741_v47 = vpop.permute.xlu0 %740 }
 0x94c   :  { %3442 = vmatmul.mubr.msk.f32.vlgmr.msra.gmra.mrb[8].mxu0 %vm93_vm4, %v741_v47 }
 0x94d   :  { %3445 = vmatpush3.msk.msra.mxu0 %vm4279_vm1, %v4138_v6  ;;  %3446 = vmatprep.mubr.msk.f32.mxu0 %vm4136_vm0, %v4135_v1 }
 0x94e   :  { %3449 = vmatprep.subr.mxu0 %v4135_v1 }
 0xa1f   :  { %v810_v48 = vpop.f32.mrb[8].mxu0 }
 0xa20   :  { %v4437_v49 = vadd.f32 %v810_v48, %v4370_v62  ;;  %v3443_v50 = vpop.f32.mrb[9].mxu0 }
 0xa22   :  { %825 = vperm.xlu0 %3863, %v4437_v49   ;;  %816 = vperm.xlu1 %3862, %v4437_v49  }
 0xa26   :  { %829 = vrot.lane.b32.xlu1 %v4437_v49, %s4140_s3  ;;  %3864 = vset.pattern.permute.xlu0 %v4142_v61 }
 0xa27   :  { %3865 = vset.pattern.permute.xlu1 %v4141_v60 }
 0xa2a   :  { %988 = vrot.lane.b32.xlu1 %v4437_v49, %s4139_s19 }
 0xaa1   :  { %v817_v51 = vpop.permute.xlu1 %816  ;;  %v826_v59 = vpop.permute.xlu0 %825 }
 0xaa2   :  { %v819_v52 = vsub.f32 %v817_v51, %v4398_v20 }
 0xaa4   :  { %v820_v54 = vmax.f32 %v819_v52, 0.0 }
 0xaa5   :  { %v830_v56 = vpop.permute.xlu1 %829 }
 0xaa6   :  { %v821_v57 = vsub.f32 %v4391_v17, %v820_v54  ;;  %832 = vst.msk [vmem:[#allocation14 + $0x1] sm:$0x1] %vm480_vm6, %v830_v56 }
 0xaa8   :  { %v822_v58 = vmax.f32 %v821_v57, 0.0 }
 0xaa9   :  { %v989_v14 = vpop.permute.xlu1 %988 }
 0xaaa   :  { %v4451_v63 = vsel %vm823_vm8, %v826_v59, %v822_v58 }
 0xaab   :  { %3447 = vmatmul.mubr.msk.f32.vlgmr.msra.gmra.mrb[10].mxu0 %vm204_vm2, %v4451_v63 }
 0xaac   :  { %3451 = vmatprep.mubr.msk.f32.mxu0 %vm4136_vm0, %v4135_v1 }
 0xaad   :  { %v909_v2 = vld [vmem:[#allocation14] sm:$0xff] }
 0xaae   :  { %3450 = vmatpush3.msra.mxu0 %v909_v2 }
 0xaaf   :  { %3745 = vmatprep.subr.bf16.mxu0 %v4137_v4 }
 0xb7e   :  { %v4458_v7 = vpop.f32.mrb[10].mxu0 }
 0xb7f   :  { %v906_v9 = vsub.f32 1.0, %v4458_v7  ;;  %v3448_v10 = vpop.f32.mrb[11].mxu0 }
 0xb81   :  { %v907_v11 = vmax.f32 %v906_v9, 0.0 }
 0xb83   :  { %v908_v12 = vmin.f32 %v4451_v63, %v907_v11 }
 0xb85   :  { %3452 = vmatmul.mubr.msk.f32.vlgmr.msra.gmra.mrb[12].mxu0 %vm204_vm2, %v908_v12 }
 0xb86   :  { %3747 = vmatpush3.bf16.msra.mxu0 %v4348_v53  ;;  %3481 = vmatprep.mubr.msk.f32.mxu0 %vm4136_vm0, %v4135_v1 }
 0xb87   :  { %3748 = vmatprep.subr.bf16.mxu0 %v4137_v4 }
 0xb8a   :  { %3750 = vmatpush3.bf16.msra.mxu0 %v4351_v55 }
 0xb8b   :  { %3484 = vmatprep.subr.mxu0 %v4135_v1 }
 0xc58   :  { %v979_v15 = vpop.f32.mrb[12].mxu0 }
 0xc59   :  { %v991_v16 = vsel %vm93_vm4, %v979_v15, %v989_v14  ;;  %v3453_v17 = vpop.f32.mrb[13].mxu0 }
 0xc5a   :  { %3471 = vmatmul.mubr.msk.f32.vlgmr.msra.gmra.mrb[6].mxu1 %vm284_vm5, %v991_v16 }
 0xc5b   :  { %3753 = vmatpush3.bf16.msra.mxu1 %v4298_v13  ;;  %3510 = vmatprep.mubr.msk.f32.mxu1 %vm4136_vm0, %v4135_v1 }
 0xc5c   :  { %3754 = vmatprep.subr.bf16.mxu1 %v4137_v4 }
 0xc5f   :  { %3756 = vmatpush3.bf16.msra.mxu1 %v4303_v18 }
 0xc60   :  { %3757 = vmatprep.subr.bf16.mxu1 %v4137_v4 }
 0xc63   :  { %3759 = vmatpush3.bf16.msra.mxu1 %v4312_v22 }
 0xc64   :  { %3760 = vmatprep.subr.bf16.mxu1 %v4137_v4 }
 0xc67   :  { %3762 = vmatpush3.bf16.msra.mxu1 %v4318_v25 }
 0xc68   :  { %3769 = vmatprep.subr.bf16.mxu1 %v4137_v4 }
 0xd2d   :  { %v1061_v20 = vpop.f32.mrb[6].mxu1 }
 0xd2e   :  { %v1065_v8 = vadd.f32 %v1061_v20, %v987_v19  ;;  %v3472_v21 = vpop.f32.mrb[7].mxu1 }
 0xd30   :  { %3892 = vtanh.f32 %v1065_v8  ;;  %v3178_v24 = vmul.f32 -1.442695, %v1065_v8 }
 0xd32   :  { %3894 = vpow2.f32 %v3178_v24 }
 0xd3a   :  { %v3893_v23 = vpop.eup %3892 }
 0xd3b   :  { %1075 = vrot.lane.b32.xlu0 %v3893_v23, %s4139_s19 }
 0xd3c   :  { %v3895_v26 = vpop.eup %3894 }
 0xd3d   :  { %v1069_v27 = vadd.f32 1.0, %v3895_v26 }
 0xd3f   :  { %3896 = vrcp.f32 %v1069_v27 }
 0xd49   :  { %v3897_v28 = vpop.eup %3896 }
 0xd4a   :  { %v1073_v31 = vmul.f32 %v3897_v28, %v4424_v43 }
 0xdad   :  { %v1076_v29 = vpop.permute.xlu0 %1075 }
 0xdae   :  { %v1078_v30 = vmul.f32 %v3897_v28, %v1076_v29 }
 0xdb0   :  { %1080 = vrot.lane.b32.xlu1 %v1078_v30, %s4139_s19 }
 0xe22   :  { %v1081_v32 = vpop.permute.xlu1 %1080 }
 0xe23   :  { %v4484_v33 = vadd.f32 %v1081_v32, %v1073_v31 }
 0xe25   :  { %3898 = vtanh.f32 %v4484_v33 }
 0xe2f   :  { %v3899_v34 = vpop.eup %3898 }
 0xe30   :  { %1086 = vrot.lane.b32.xlu0 %v3899_v34, %s4139_s19 }
 0xea2   :  { %v1087_v35 = vpop.permute.xlu0 %1086 }
 0xea3   :  { %v1089_v36 = vmul.f32 %v3897_v28, %v1087_v35 }
 0xea5   :  { %1091 = vrot.lane.b32.xlu1 %v1089_v36, %s4140_s3 }
 0xf17   :  { %v1092_v37 = vpop.permute.xlu1 %1091 }
 0xf18   :  { %3482 = vmatmul.mubr.msk.f32.vlgmr.msra.gmra.mrb[14].mxu0 %vm93_vm4, %v1092_v37 }
 0xf19   :  { %3485 = vmatpush3.msk.msra.mxu0 %vm4279_vm1, %v4138_v6  ;;  %3486 = vmatprep.mubr.msk.f32.mxu0 %vm4136_vm0, %v4135_v1 }
 0xf1a   :  { %3489 = vmatprep.subr.mxu0 %v4135_v1 }
 0xfeb   :  { %v1161_v38 = vpop.f32.mrb[14].mxu0 }
 0xfec   :  { %v4497_v39 = vadd.f32 %v1161_v38, %v4370_v62  ;;  %v3483_v40 = vpop.f32.mrb[15].mxu0 }
 0xfee   :  { %1176 = vperm.xlu1 %3865, %v4497_v39   ;;  %1167 = vperm.xlu0 %3864, %v4497_v39  }
 0xff2   :  { %1180 = vrot.lane.b32.xlu1 %v4497_v39, %s4140_s3  ;;  %1339 = vrot.lane.b32.xlu0 %v4497_v39, %s4139_s19 }
 0xff3   :  { %3866 = vset.pattern.permute.xlu1 %v4142_v61  ;;  %3867 = vset.pattern.permute.xlu0 %v4141_v60 }
0x106d   :  { %v1177_v41 = vpop.permute.xlu1 %1176  ;;  %v1168_v42 = vpop.permute.xlu0 %1167 }
0x106e   :  { %v1170_v43 = vsub.f32 %v1168_v42, %v4458_v7  ;;  %v1338_v7 = vld [vmem:[#allocation2 + $0x3] sm:$0x1] }
0x1070   :  { %v1171_v44 = vmax.f32 %v1170_v43, 0.0 }
0x1071   :  { %v1181_v45 = vpop.permute.xlu1 %1180  ;;  %v1340_v58 = vpop.permute.xlu0 %1339 }
0x1072   :  { %v1172_v46 = vsub.f32 %v4451_v63, %v1171_v44  ;;  %1183 = vst.msk [vmem:[#allocation14 + $0x2] sm:$0x1] %vm480_vm6, %v1181_v45 }
0x1074   :  { %v1173_v47 = vmax.f32 %v1172_v46, 0.0 }
0x1076   :  { %v4511_v48 = vsel %vm1174_vm9, %v1177_v41, %v1173_v47 }
0x1077   :  { %3487 = vmatmul.mubr.msk.f32.vlgmr.msra.gmra.mrb[16].mxu0 %vm204_vm2, %v4511_v48 }
0x1078   :  { %3491 = vmatprep.mubr.msk.f32.mxu0 %vm4136_vm0, %v4135_v1 }
0x1079   :  { %v1260_v50 = vld [vmem:[#allocation14] sm:$0xff] }
0x107a   :  { %3490 = vmatpush3.msra.mxu0 %v1260_v50 }
0x107b   :  { %3763 = vmatprep.subr.bf16.mxu0 %v4137_v4 }
0x114a   :  { %v4518_v51 = vpop.f32.mrb[16].mxu0 }
0x114b   :  { %v1257_v52 = vsub.f32 1.0, %v4518_v51  ;;  %v3488_v54 = vpop.f32.mrb[17].mxu0 }
0x114d   :  { %v1258_v56 = vmax.f32 %v1257_v52, 0.0  ;;  %v1689_v52 = vld [vmem:[#allocation2 + $0x4] sm:$0x1] }
0x114f   :  { %v1259_v57 = vmin.f32 %v4511_v48, %v1258_v56 }
0x1151   :  { %3492 = vmatmul.mubr.msk.f32.vlgmr.msra.gmra.mrb[18].mxu0 %vm204_vm2, %v1259_v57 }
0x1152   :  { %3765 = vmatpush3.bf16.msra.mxu0 %v4348_v53  ;;  %3521 = vmatprep.mubr.msk.f32.mxu0 %vm4136_vm0, %v4135_v1 }
0x1153   :  { %3766 = vmatprep.subr.bf16.mxu0 %v4137_v4 }
0x1156   :  { %3768 = vmatpush3.bf16.msra.mxu0 %v4351_v55 }
0x1157   :  { %3524 = vmatprep.subr.mxu0 %v4135_v1 }
0x1224   :  { %v1330_v59 = vpop.f32.mrb[18].mxu0 }
0x1225   :  { %v1342_v63 = vsel %vm93_vm4, %v1330_v59, %v1340_v58  ;;  %v3493_v2 = vpop.f32.mrb[19].mxu0 }
0x1226   :  { %3511 = vmatmul.mubr.msk.f32.vlgmr.msra.gmra.mrb[8].mxu1 %vm284_vm5, %v1342_v63 }
0x1227   :  { %3771 = vmatpush3.bf16.msra.mxu1 %v4298_v13  ;;  %3550 = vmatprep.mubr.msk.f32.mxu1 %vm4136_vm0, %v4135_v1 }
0x1228   :  { %3772 = vmatprep.subr.bf16.mxu1 %v4137_v4 }
0x122b   :  { %3774 = vmatpush3.bf16.msra.mxu1 %v4303_v18 }
0x122c   :  { %3775 = vmatprep.subr.bf16.mxu1 %v4137_v4 }
0x122f   :  { %3777 = vmatpush3.bf16.msra.mxu1 %v4312_v22 }
0x1230   :  { %3778 = vmatprep.subr.bf16.mxu1 %v4137_v4 }
0x1233   :  { %3780 = vmatpush3.bf16.msra.mxu1 %v4318_v25 }
0x1234   :  { %3787 = vmatprep.subr.bf16.mxu1 %v4137_v4 }
0x12f9   :  { %v1412_v9 = vpop.f32.mrb[8].mxu1 }
0x12fa   :  { %v1416_v10 = vadd.f32 %v1412_v9, %v1338_v7  ;;  %v3512_v11 = vpop.f32.mrb[9].mxu1 }
0x12fc   :  { %3900 = vtanh.f32 %v1416_v10  ;;  %v3184_v14 = vmul.f32 -1.442695, %v1416_v10 }
0x12fe   :  { %3902 = vpow2.f32 %v3184_v14 }
0x1306   :  { %v3901_v12 = vpop.eup %3900 }
0x1307   :  { %1426 = vrot.lane.b32.xlu1 %v3901_v12, %s4139_s19 }
0x1308   :  { %v3903_v15 = vpop.eup %3902 }
0x1309   :  { %v1420_v16 = vadd.f32 1.0, %v3903_v15 }
0x130b   :  { %3904 = vrcp.f32 %v1420_v16 }
0x1315   :  { %v3905_v17 = vpop.eup %3904 }
0x1316   :  { %v1424_v8 = vmul.f32 %v3905_v17, %v4484_v33 }
0x1379   :  { %v1427_v19 = vpop.permute.xlu1 %1426 }
0x137a   :  { %v1429_v20 = vmul.f32 %v3905_v17, %v1427_v19 }
0x137c   :  { %1431 = vrot.lane.b32.xlu0 %v1429_v20, %s4139_s19 }
0x13ee   :  { %v1432_v21 = vpop.permute.xlu0 %1431 }
0x13ef   :  { %v4544_v23 = vadd.f32 %v1432_v21, %v1424_v8 }
0x13f1   :  { %3906 = vtanh.f32 %v4544_v23 }
0x13fb   :  { %v3907_v24 = vpop.eup %3906 }
0x13fc   :  { %1437 = vrot.lane.b32.xlu1 %v3907_v24, %s4139_s19 }
0x146e   :  { %v1438_v26 = vpop.permute.xlu1 %1437 }
0x146f   :  { %v1440_v27 = vmul.f32 %v3905_v17, %v1438_v26 }
0x1471   :  { %1442 = vrot.lane.b32.xlu0 %v1440_v27, %s4140_s3 }
0x14e3   :  { %v1443_v28 = vpop.permute.xlu0 %1442 }
0x14e4   :  { %3522 = vmatmul.mubr.msk.f32.vlgmr.msra.gmra.mrb[20].mxu0 %vm93_vm4, %v1443_v28 }
0x14e5   :  { %3525 = vmatpush3.msk.msra.mxu0 %vm4279_vm1, %v4138_v6  ;;  %3526 = vmatprep.mubr.msk.f32.mxu0 %vm4136_vm0, %v4135_v1 }
0x14e6   :  { %3529 = vmatprep.subr.mxu0 %v4135_v1 }
0x15b7   :  { %v1512_v29 = vpop.f32.mrb[20].mxu0 }
0x15b8   :  { %v4557_v30 = vadd.f32 %v1512_v29, %v4370_v62  ;;  %v3523_v31 = vpop.f32.mrb[21].mxu0 }
0x15ba   :  { %1527 = vperm.xlu0 %3867, %v4557_v30   ;;  %1518 = vperm.xlu1 %3866, %v4557_v30  }
0x15be   :  { %1531 = vrot.lane.b32.xlu1 %v4557_v30, %s4140_s3  ;;  %3868 = vset.pattern.permute.xlu0 %v4142_v61 }
0x15bf   :  { %3869 = vset.pattern.permute.xlu1 %v4141_v60 }
0x15c2   :  { %1690 = vrot.lane.b32.xlu1 %v4557_v30, %s4139_s19 }
0x1639   :  { %v1519_v32 = vpop.permute.xlu1 %1518  ;;  %v1528_v38 = vpop.permute.xlu0 %1527 }
0x163a   :  { %v1521_v33 = vsub.f32 %v1519_v32, %v4518_v51 }
0x163c   :  { %v1522_v34 = vmax.f32 %v1521_v33, 0.0 }
0x163d   :  { %v1532_v35 = vpop.permute.xlu1 %1531 }
0x163e   :  { %v1523_v36 = vsub.f32 %v4511_v48, %v1522_v34  ;;  %1534 = vst.msk [vmem:[#allocation14 + $0x3] sm:$0x1] %vm480_vm6, %v1532_v35 }
0x1640   :  { %v1524_v37 = vmax.f32 %v1523_v36, 0.0 }
0x1641   :  { %v1691_v47 = vpop.permute.xlu1 %1690 }
0x1642   :  { %v4571_v40 = vsel %vm1525_vm10, %v1528_v38, %v1524_v37 }
0x1643   :  { %3527 = vmatmul.mubr.msk.f32.vlgmr.msra.gmra.mrb[22].mxu0 %vm204_vm2, %v4571_v40 }
0x1644   :  { %3531 = vmatprep.mubr.msk.f32.mxu0 %vm4136_vm0, %v4135_v1 }
0x1645   :  { %v1611_v41 = vld [vmem:[#allocation14] sm:$0xff] }
0x1646   :  { %3530 = vmatpush3.msra.mxu0 %v1611_v41 }
0x1647   :  { %3781 = vmatprep.subr.bf16.mxu0 %v4137_v4 }
0x1716   :  { %v4578_v42 = vpop.f32.mrb[22].mxu0 }
0x1717   :  { %v1608_v43 = vsub.f32 1.0, %v4578_v42  ;;  %v3528_v44 = vpop.f32.mrb[23].mxu0 }
0x1718   :  { %v2040_v44 = vld [vmem:[#allocation2 + $0x5] sm:$0x1] }
0x1719   :  { %v1609_v45 = vmax.f32 %v1608_v43, 0.0 }
0x171b   :  { %v1610_v46 = vmin.f32 %v4571_v40, %v1609_v45 }
0x171d   :  { %3532 = vmatmul.mubr.msk.f32.vlgmr.msra.gmra.mrb[24].mxu0 %vm204_vm2, %v1610_v46 }
0x171e   :  { %3783 = vmatpush3.bf16.msra.mxu0 %v4348_v53  ;;  %3561 = vmatprep.mubr.msk.f32.mxu0 %vm4136_vm0, %v4135_v1 }
0x171f   :  { %3784 = vmatprep.subr.bf16.mxu0 %v4137_v4 }
0x1722   :  { %3786 = vmatpush3.bf16.msra.mxu0 %v4351_v55 }
0x1723   :  { %3564 = vmatprep.subr.mxu0 %v4135_v1 }
0x17f0   :  { %v1681_v48 = vpop.f32.mrb[24].mxu0 }
0x17f1   :  { %v1693_v50 = vsel %vm93_vm4, %v1681_v48, %v1691_v47  ;;  %v3533_v51 = vpop.f32.mrb[25].mxu0 }
0x17f2   :  { %3551 = vmatmul.mubr.msk.f32.vlgmr.msra.gmra.mrb[10].mxu1 %vm284_vm5, %v1693_v50 }
0x17f3   :  { %3789 = vmatpush3.bf16.msra.mxu1 %v4298_v13  ;;  %3590 = vmatprep.mubr.msk.f32.mxu1 %vm4136_vm0, %v4135_v1 }
0x17f4   :  { %3790 = vmatprep.subr.bf16.mxu1 %v4137_v4 }
0x17f7   :  { %3792 = vmatpush3.bf16.msra.mxu1 %v4303_v18 }
0x17f8   :  { %3793 = vmatprep.subr.bf16.mxu1 %v4137_v4 }
0x17fb   :  { %3795 = vmatpush3.bf16.msra.mxu1 %v4312_v22 }
0x17fc   :  { %3796 = vmatprep.subr.bf16.mxu1 %v4137_v4 }
0x17ff   :  { %3798 = vmatpush3.bf16.msra.mxu1 %v4318_v25 }
0x1800   :  { %3805 = vmatprep.subr.bf16.mxu1 %v4137_v4 }
0x18c5   :  { %v1763_v54 = vpop.f32.mrb[10].mxu1 }
0x18c6   :  { %v1767_v56 = vadd.f32 %v1763_v54, %v1689_v52  ;;  %v3552_v57 = vpop.f32.mrb[11].mxu1 }
0x18c8   :  { %3908 = vtanh.f32 %v1767_v56  ;;  %v3190_v59 = vmul.f32 -1.442695, %v1767_v56 }
0x18ca   :  { %3910 = vpow2.f32 %v3190_v59 }
0x18d2   :  { %v3909_v58 = vpop.eup %3908 }
0x18d3   :  { %1777 = vrot.lane.b32.xlu0 %v3909_v58, %s4139_s19 }
0x18d4   :  { %v3911_v63 = vpop.eup %3910 }
0x18d5   :  { %v1771_v2 = vadd.f32 1.0, %v3911_v63 }
0x18d7   :  { %3912 = vrcp.f32 %v1771_v2 }
0x18e1   :  { %v3913_v7 = vpop.eup %3912 }
0x18e2   :  { %v1775_v11 = vmul.f32 %v3913_v7, %v4544_v23 }
0x1945   :  { %v1778_v9 = vpop.permute.xlu0 %1777 }
0x1946   :  { %v1780_v10 = vmul.f32 %v3913_v7, %v1778_v9 }
0x1948   :  { %1782 = vrot.lane.b32.xlu1 %v1780_v10, %s4139_s19 }
0x19ba   :  { %v1783_v12 = vpop.permute.xlu1 %1782 }
0x19bb   :  { %v4604_v14 = vadd.f32 %v1783_v12, %v1775_v11 }
0x19bd   :  { %3914 = vtanh.f32 %v4604_v14 }
0x19c7   :  { %v3915_v15 = vpop.eup %3914 }
0x19c8   :  { %1788 = vrot.lane.b32.xlu0 %v3915_v15, %s4139_s19 }
0x1a3a   :  { %v1789_v16 = vpop.permute.xlu0 %1788 }
0x1a3b   :  { %v1791_v17 = vmul.f32 %v3913_v7, %v1789_v16 }
0x1a3d   :  { %1793 = vrot.lane.b32.xlu1 %v1791_v17, %s4140_s3 }
0x1aaf   :  { %v1794_v19 = vpop.permute.xlu1 %1793 }
0x1ab0   :  { %3562 = vmatmul.mubr.msk.f32.vlgmr.msra.gmra.mrb[26].mxu0 %vm93_vm4, %v1794_v19 }
0x1ab1   :  { %3565 = vmatpush3.msk.msra.mxu0 %vm4279_vm1, %v4138_v6  ;;  %3566 = vmatprep.mubr.msk.f32.mxu0 %vm4136_vm0, %v4135_v1 }
0x1ab2   :  { %3569 = vmatprep.subr.mxu0 %v4135_v1 }
0x1b83   :  { %v1863_v20 = vpop.f32.mrb[26].mxu0 }
0x1b84   :  { %v4617_v8 = vadd.f32 %v1863_v20, %v4370_v62  ;;  %v3563_v21 = vpop.f32.mrb[27].mxu0 }
0x1b86   :  { %1878 = vperm.xlu1 %3869, %v4617_v8   ;;  %1869 = vperm.xlu0 %3868, %v4617_v8  }
0x1b8a   :  { %1882 = vrot.lane.b32.xlu1 %v4617_v8, %s4140_s3  ;;  %2041 = vrot.lane.b32.xlu0 %v4617_v8, %s4139_s19 }
0x1b8b   :  { %3870 = vset.pattern.permute.xlu1 %v4142_v61  ;;  %3871 = vset.pattern.permute.xlu0 %v4141_v60 }
0x1c05   :  { %v1879_v23 = vpop.permute.xlu1 %1878  ;;  %v1870_v24 = vpop.permute.xlu0 %1869 }
0x1c06   :  { %v1872_v26 = vsub.f32 %v1870_v24, %v4578_v42 }
0x1c08   :  { %v1873_v27 = vmax.f32 %v1872_v26, 0.0 }
0x1c09   :  { %v1883_v28 = vpop.permute.xlu1 %1882 }
0x1c0a   :  { %v1874_v29 = vsub.f32 %v4571_v40, %v1873_v27  ;;  %1885 = vst.msk [vmem:[#allocation14 + $0x4] sm:$0x1] %vm480_vm6, %v1883_v28  ;;  %v2042_v40 = vpop.permute.xlu0 %2041 }
0x1c0c   :  { %v1875_v31 = vmax.f32 %v1874_v29, 0.0 }
0x1c0e   :  { %v4631_v32 = vsel %vm1876_vm11, %v1879_v23, %v1875_v31 }
0x1c0f   :  { %3567 = vmatmul.mubr.msk.f32.vlgmr.msra.gmra.mrb[28].mxu0 %vm204_vm2, %v4631_v32 }
0x1c10   :  { %3571 = vmatprep.mubr.msk.f32.mxu0 %vm4136_vm0, %v4135_v1 }
0x1c11   :  { %v1962_v33 = vld [vmem:[#allocation14] sm:$0xff] }
0x1c12   :  { %3570 = vmatpush3.msra.mxu0 %v1962_v33 }
0x1c13   :  { %3799 = vmatprep.subr.bf16.mxu0 %v4137_v4 }
0x1ce2   :  { %v4638_v34 = vpop.f32.mrb[28].mxu0 }
0x1ce3   :  { %v1959_v35 = vsub.f32 1.0, %v4638_v34  ;;  %v3568_v36 = vpop.f32.mrb[29].mxu0 }
0x1ce5   :  { %v1960_v37 = vmax.f32 %v1959_v35, 0.0 }
0x1ce7   :  { %v1961_v38 = vmin.f32 %v4631_v32, %v1960_v37  ;;  %v2391_v37 = vld [vmem:[#allocation2 + $0x6] sm:$0x1] }
0x1ce9   :  { %3572 = vmatmul.mubr.msk.f32.vlgmr.msra.gmra.mrb[30].mxu0 %vm204_vm2, %v1961_v38 }
0x1cea   :  { %3801 = vmatpush3.bf16.msra.mxu0 %v4348_v53  ;;  %3601 = vmatprep.mubr.msk.f32.mxu0 %vm4136_vm0, %v4135_v1 }
0x1ceb   :  { %3802 = vmatprep.subr.bf16.mxu0 %v4137_v4 }
0x1cee   :  { %3804 = vmatpush3.bf16.msra.mxu0 %v4351_v55 }
0x1cef   :  { %3604 = vmatprep.subr.mxu0 %v4135_v1 }
0x1dbc   :  { %v2032_v41 = vpop.f32.mrb[30].mxu0 }
0x1dbd   :  { %v2044_v42 = vsel %vm93_vm4, %v2032_v41, %v2042_v40  ;;  %v3573_v43 = vpop.f32.mrb[31].mxu0 }
0x1dbe   :  { %3591 = vmatmul.mubr.msk.f32.vlgmr.msra.gmra.mrb[12].mxu1 %vm284_vm5, %v2044_v42 }
0x1dbf   :  { %3807 = vmatpush3.bf16.msra.mxu1 %v4298_v13  ;;  %3630 = vmatprep.mubr.msk.f32.mxu1 %vm4136_vm0, %v4135_v1 }
0x1dc0   :  { %3808 = vmatprep.subr.bf16.mxu1 %v4137_v4 }
0x1dc3   :  { %3810 = vmatpush3.bf16.msra.mxu1 %v4303_v18 }
0x1dc4   :  { %3811 = vmatprep.subr.bf16.mxu1 %v4137_v4 }
0x1dc7   :  { %3813 = vmatpush3.bf16.msra.mxu1 %v4312_v22 }
0x1dc8   :  { %3814 = vmatprep.subr.bf16.mxu1 %v4137_v4 }
0x1dcb   :  { %3816 = vmatpush3.bf16.msra.mxu1 %v4318_v25 }
0x1dcc   :  { %3823 = vmatprep.subr.bf16.mxu1 %v4137_v4 }
0x1e91   :  { %v2114_v45 = vpop.f32.mrb[12].mxu1 }
0x1e92   :  { %v2118_v46 = vadd.f32 %v2114_v45, %v2040_v44  ;;  %v3592_v47 = vpop.f32.mrb[13].mxu1 }
0x1e94   :  { %3916 = vtanh.f32 %v2118_v46  ;;  %v3196_v50 = vmul.f32 -1.442695, %v2118_v46 }
0x1e96   :  { %3918 = vpow2.f32 %v3196_v50 }
0x1e9e   :  { %v3917_v48 = vpop.eup %3916 }
0x1e9f   :  { %2128 = vrot.lane.b32.xlu1 %v3917_v48, %s4139_s19 }
0x1ea0   :  { %v3919_v51 = vpop.eup %3918 }
0x1ea1   :  { %v2122_v52 = vadd.f32 1.0, %v3919_v51 }
0x1ea3   :  { %3920 = vrcp.f32 %v2122_v52 }
0x1ead   :  { %v3921_v54 = vpop.eup %3920 }
0x1eae   :  { %v2126_v58 = vmul.f32 %v3921_v54, %v4604_v14 }
0x1f11   :  { %v2129_v56 = vpop.permute.xlu1 %2128 }
0x1f12   :  { %v2131_v57 = vmul.f32 %v3921_v54, %v2129_v56 }
0x1f14   :  { %2133 = vrot.lane.b32.xlu0 %v2131_v57, %s4139_s19 }
0x1f86   :  { %v2134_v59 = vpop.permute.xlu0 %2133 }
0x1f87   :  { %v4664_v63 = vadd.f32 %v2134_v59, %v2126_v58 }
0x1f89   :  { %3922 = vtanh.f32 %v4664_v63 }
0x1f93   :  { %v3923_v2 = vpop.eup %3922 }
0x1f94   :  { %2139 = vrot.lane.b32.xlu1 %v3923_v2, %s4139_s19 }
0x2006   :  { %v2140_v7 = vpop.permute.xlu1 %2139 }
0x2007   :  { %v2142_v9 = vmul.f32 %v3921_v54, %v2140_v7 }
0x2009   :  { %2144 = vrot.lane.b32.xlu0 %v2142_v9, %s4140_s3 }
0x207b   :  { %v2145_v10 = vpop.permute.xlu0 %2144 }
0x207c   :  { %3602 = vmatmul.mubr.msk.f32.vlgmr.msra.gmra.mrb[32].mxu0 %vm93_vm4, %v2145_v10 }
0x207d   :  { %3605 = vmatpush3.msk.msra.mxu0 %vm4279_vm1, %v4138_v6  ;;  %3606 = vmatprep.mubr.msk.f32.mxu0 %vm4136_vm0, %v4135_v1 }
0x207e   :  { %3609 = vmatprep.subr.mxu0 %v4135_v1 }
0x214f   :  { %v2214_v11 = vpop.f32.mrb[32].mxu0 }
0x2150   :  { %v4677_v12 = vadd.f32 %v2214_v11, %v4370_v62  ;;  %v3603_v14 = vpop.f32.mrb[33].mxu0 }
0x2152   :  { %2229 = vperm.xlu0 %3871, %v4677_v12   ;;  %2220 = vperm.xlu1 %3870, %v4677_v12  }
0x2156   :  { %2233 = vrot.lane.b32.xlu1 %v4677_v12, %s4140_s3  ;;  %3872 = vset.pattern.permute.xlu0 %v4142_v61 }
0x2157   :  { %3873 = vset.pattern.permute.xlu1 %v4141_v60 }
0x215a   :  { %2392 = vrot.lane.b32.xlu1 %v4677_v12, %s4139_s19 }
0x21d1   :  { %v2221_v15 = vpop.permute.xlu1 %2220  ;;  %v2230_v23 = vpop.permute.xlu0 %2229 }
0x21d2   :  { %v2223_v16 = vsub.f32 %v2221_v15, %v4638_v34 }
0x21d4   :  { %v2224_v17 = vmax.f32 %v2223_v16, 0.0 }
0x21d5   :  { %v2234_v19 = vpop.permute.xlu1 %2233 }
0x21d6   :  { %v2225_v20 = vsub.f32 %v4631_v32, %v2224_v17  ;;  %2236 = vst.msk [vmem:[#allocation14 + $0x5] sm:$0x1] %vm480_vm6, %v2234_v19 }
0x21d8   :  { %v2226_v21 = vmax.f32 %v2225_v20, 0.0 }
0x21d9   :  { %v2393_v33 = vpop.permute.xlu1 %2392 }
0x21da   :  { %v4691_v24 = vsel %vm2227_vm12, %v2230_v23, %v2226_v21  ;;  %v2742_v23 = vld [vmem:[#allocation2 + $0x7] sm:$0x1] }
0x21db   :  { %3607 = vmatmul.mubr.msk.f32.vlgmr.msra.gmra.mrb[34].mxu0 %vm204_vm2, %v4691_v24 }
0x21dc   :  { %3611 = vmatprep.mubr.msk.f32.mxu0 %vm4136_vm0, %v4135_v1 }
0x21dd   :  { %v2313_v26 = vld [vmem:[#allocation14] sm:$0xff] }
0x21de   :  { %3610 = vmatpush3.msra.mxu0 %v2313_v26 }
0x21df   :  { %3817 = vmatprep.subr.bf16.mxu0 %v4137_v4 }
0x22ae   :  { %v4698_v27 = vpop.f32.mrb[34].mxu0 }
0x22af   :  { %v2310_v28 = vsub.f32 1.0, %v4698_v27  ;;  %v3608_v29 = vpop.f32.mrb[35].mxu0 }
0x22b1   :  { %v2311_v31 = vmax.f32 %v2310_v28, 0.0 }
0x22b3   :  { %v2312_v32 = vmin.f32 %v4691_v24, %v2311_v31 }
0x22b5   :  { %3612 = vmatmul.mubr.msk.f32.vlgmr.msra.gmra.mrb[36].mxu0 %vm204_vm2, %v2312_v32 }
0x22b6   :  { %3819 = vmatpush3.bf16.msra.mxu0 %v4348_v53  ;;  %3641 = vmatprep.mubr.msk.f32.mxu0 %vm4136_vm0, %v4135_v1 }
0x22b7   :  { %3820 = vmatprep.subr.bf16.mxu0 %v4137_v4 }
0x22ba   :  { %3822 = vmatpush3.bf16.msra.mxu0 %v4351_v55 }
0x22bb   :  { %3644 = vmatprep.subr.mxu0 %v4135_v1 }
0x2388   :  { %v2383_v34 = vpop.f32.mrb[36].mxu0 }
0x2389   :  { %v2395_v35 = vsel %vm93_vm4, %v2383_v34, %v2393_v33  ;;  %v3613_v36 = vpop.f32.mrb[37].mxu0 }
0x238a   :  { %3631 = vmatmul.mubr.msk.f32.vlgmr.msra.gmra.mrb[14].mxu1 %vm284_vm5, %v2395_v35 }
0x238b   :  { %3825 = vmatpush3.bf16.msra.mxu1 %v4298_v13  ;;  %3670 = vmatprep.mubr.msk.f32.mxu1 %vm4136_vm0, %v4135_v1 }
0x238c   :  { %3826 = vmatprep.subr.bf16.mxu1 %v4137_v4 }
0x238f   :  { %3828 = vmatpush3.bf16.msra.mxu1 %v4303_v18 }
0x2390   :  { %3829 = vmatprep.subr.bf16.mxu1 %v4137_v4 }
0x2393   :  { %3831 = vmatpush3.bf16.msra.mxu1 %v4312_v22 }
0x2394   :  { %3832 = vmatprep.subr.bf16.mxu1 %v4137_v4 }
0x2397   :  { %3834 = vmatpush3.bf16.msra.mxu1 %v4318_v25 }
0x245d   :  { %v2465_v38 = vpop.f32.mrb[14].mxu1 }
0x245e   :  { %v2469_v40 = vadd.f32 %v2465_v38, %v2391_v37  ;;  %v3632_v41 = vpop.f32.mrb[15].mxu1 }
0x2460   :  { %3924 = vtanh.f32 %v2469_v40  ;;  %v3202_v42 = vmul.f32 -1.442695, %v2469_v40 }
0x2462   :  { %3926 = vpow2.f32 %v3202_v42 }
0x246a   :  { %v3925_v13 = vpop.eup %3924 }
0x246b   :  { %2479 = vrot.lane.b32.xlu0 %v3925_v13, %s4139_s19  ;;  %v3940_v13 = vld [vmem:[%s4865_s5] sm:$0x1]  ;;  %s4144_s5 = smov [#allocation11]  }
0x246c   :  { %v3927_v43 = vpop.eup %3926  ;;  %s3108_s22 = sshll.u32 %s4144_s5, 4  ;;  %s3109_s22 = int_to_ptr.vmem [resolvable:$true] %s3108_s22 }
0x246d   :  { %v2473_v18 = vadd.f32 1.0, %v3927_v43  ;;  %s4029_s29 = scalar_lea.vmem %s3109_s22, 128  ;;  %p4034_p5 = scmp.lt.s32.totalorder %s3109_s22, %s3109_s22 }
0x246e   :  { %p4030_p4 = scmp.ne.s32.totalorder %s3109_s22, %s4029_s29  ;;  %p4035_p6 = scmp.lt.s32.totalorder %s4029_s29, %s4029_s29 }
0x246f   :  { %3928 = vrcp.f32 %v2473_v18 }
0x2470   :  { %p4036_p7 = por %p4035_p6, %p4034_p5 }
0x2472   :  { %p4037_p8 = pnand %p4036_p7, %p4030_p4 }
0x2479   :  { %v3929_v44 = vpop.eup %3928 }
0x247a   :  { %v2477_v25 = vmul.f32 %v3929_v44, %v4664_v63 }
0x24dd   :  { %v2480_v45 = vpop.permute.xlu0 %2479 }
0x24de   :  { %v2482_v22 = vmul.f32 %v3929_v44, %v2480_v45 }
0x24e0   :  { %2484 = vrot.lane.b32.xlu1 %v2482_v22, %s4139_s19 }
0x2552   :  { %v2485_v46 = vpop.permute.xlu1 %2484 }
0x2553   :  { %v4723_v47 = vadd.f32 %v2485_v46, %v2477_v25 }
0x2555   :  { %3930 = vtanh.f32 %v4723_v47 }
0x255f   :  { %v3931_v48 = vpop.eup %3930 }
0x2560   :  { %2490 = vrot.lane.b32.xlu0 %v3931_v48, %s4139_s19 }
0x25d2   :  { %v2491_v50 = vpop.permute.xlu0 %2490 }
0x25d3   :  { %v2493_v51 = vmul.f32 %v3929_v44, %v2491_v50 }
0x25d5   :  { %2495 = vrot.lane.b32.xlu1 %v2493_v51, %s4140_s3 }
0x2647   :  { %v2496_v52 = vpop.permute.xlu1 %2495 }
0x2648   :  { %3642 = vmatmul.mubr.msk.f32.vlgmr.msra.gmra.mrb[38].mxu0 %vm93_vm4, %v2496_v52 }
0x2649   :  { %3645 = vmatpush3.msk.msra.mxu0 %vm4279_vm1, %v4138_v6  ;;  %3646 = vmatprep.mubr.msk.f32.mxu0 %vm4136_vm0, %v4135_v1 }
0x264a   :  { %3649 = vmatprep.subr.mxu0 %v4135_v1 }
0x271b   :  { %v2565_v54 = vpop.f32.mrb[38].mxu0 }
0x271c   :  { %v4736_v56 = vadd.f32 %v2565_v54, %v4370_v62  ;;  %v3643_v57 = vpop.f32.mrb[39].mxu0 }
0x271e   :  { %2580 = vperm.xlu1 %3873, %v4736_v56   ;;  %2571 = vperm.xlu0 %3872, %v4736_v56  }
0x2722   :  { %2584 = vrot.lane.b32.xlu1 %v4736_v56, %s4140_s3  ;;  %2743 = vrot.lane.b32.xlu0 %v4736_v56, %s4139_s19 }
0x2723   :  { %3874 = vset.pattern.permute.xlu1 %v4142_v61  ;;  %3875 = vset.pattern.permute.xlu0 %v4141_v60 }
0x279d   :  { %v2581_v58 = vpop.permute.xlu1 %2580  ;;  %v2572_v59 = vpop.permute.xlu0 %2571 }
0x279e   :  { %v2574_v62 = vsub.f32 %v2572_v59, %v4698_v27 }
0x27a0   :  { %v2575_v63 = vmax.f32 %v2574_v62, 0.0 }
0x27a1   :  { %v2585_v2 = vpop.permute.xlu1 %2584  ;;  %v2744_v17 = vpop.permute.xlu0 %2743 }
0x27a2   :  { %v2576_v7 = vsub.f32 %v4691_v24, %v2575_v63  ;;  %2587 = vst.msk [vmem:[#allocation14 + $0x6] sm:$0x1] %vm480_vm6, %v2585_v2 }
0x27a4   :  { %v2577_v9 = vmax.f32 %v2576_v7, 0.0 }
0x27a6   :  { %v4750_v10 = vsel %vm2578_vm13, %v2581_v58, %v2577_v9 }
0x27a7   :  { %3647 = vmatmul.mubr.msk.f32.vlgmr.msra.gmra.mrb[40].mxu0 %vm204_vm2, %v4750_v10 }
0x27a8   :  { %3651 = vmatprep.mubr.msk.f32.mxu0 %vm4136_vm0, %v4135_v1 }
0x27a9   :  { %v2664_v60 = vld [vmem:[#allocation14] sm:$0xff] }
0x27aa   :  { %3650 = vmatpush3.msra.mxu0 %v2664_v60 }
0x27ab   :  { %3835 = vmatprep.subr.bf16.mxu0 %v4137_v4 }
0x287a   :  { %v4757_v61 = vpop.f32.mrb[40].mxu0 }
0x287b   :  { %v2661_v11 = vsub.f32 1.0, %v4757_v61  ;;  %v3648_v14 = vpop.f32.mrb[41].mxu0 }
0x287d   :  { %v2662_v15 = vmax.f32 %v2661_v11, 0.0 }
0x287f   :  { %v2663_v16 = vmin.f32 %v4750_v10, %v2662_v15 }
0x2881   :  { %3652 = vmatmul.mubr.msk.f32.vlgmr.msra.gmra.mrb[42].mxu0 %vm204_vm2, %v2663_v16 }
0x2882   :  { %3837 = vmatpush3.bf16.msra.mxu0 %v4348_v53  ;;  %3681 = vmatprep.mubr.msk.f32.mxu0 %vm4136_vm0, %v4135_v1 }
0x2883   :  { %3838 = vmatprep.subr.bf16.mxu0 %v4137_v4 }
0x2886   :  { %3840 = vmatpush3.bf16.msra.mxu0 %v4351_v55 }
0x2887   :  { %3684 = vmatprep.subr.mxu0 %v4135_v1 }
0x2954   :  { %v2734_v19 = vpop.f32.mrb[42].mxu0 }
0x2955   :  { %v2746_v20 = vsel %vm93_vm4, %v2734_v19, %v2744_v17  ;;  %v3653_v21 = vpop.f32.mrb[43].mxu0 }
0x2956   :  { %3671 = vmatmul.mubr.msk.f32.vlgmr.msra.gmra.mrb[16].mxu1 %vm284_vm5, %v2746_v20 }
0x2a29   :  { %v2816_v24 = vpop.f32.mrb[16].mxu1 }
0x2a2a   :  { %v2820_v26 = vadd.f32 %v2816_v24, %v2742_v23  ;;  %v3672_v53 = vpop.f32.mrb[17].mxu1 }
0x2a2c   :  { %3932 = vtanh.f32 %v2820_v26  ;;  %v3208_v4 = vmul.f32 -1.442695, %v2820_v26 }
0x2a2e   :  { %3934 = vpow2.f32 %v3208_v4 }
0x2a36   :  { %v3933_v27 = vpop.eup %3932 }
0x2a37   :  { %2830 = vrot.lane.b32.xlu1 %v3933_v27, %s4139_s19 }
0x2a38   :  { %v3935_v55 = vpop.eup %3934 }
0x2a39   :  { %v2824_v28 = vadd.f32 1.0, %v3935_v55 }
0x2a3b   :  { %3936 = vrcp.f32 %v2824_v28 }
0x2a45   :  { %v3937_v29 = vpop.eup %3936 }
0x2a46   :  { %v2828_v33 = vmul.f32 %v3937_v29, %v4723_v47 }
0x2aa9   :  { %v2831_v31 = vpop.permute.xlu1 %2830 }
0x2aaa   :  { %v2833_v32 = vmul.f32 %v3937_v29, %v2831_v31 }
0x2aac   :  { %2835 = vrot.lane.b32.xlu0 %v2833_v32, %s4139_s19 }
0x2b1e   :  { %v2836_v34 = vpop.permute.xlu0 %2835 }
0x2b1f   :  { %v2838_v35 = vadd.f32 %v2836_v34, %v2828_v33 }
0x2b21   :  { %3938 = vtanh.f32 %v2838_v35 }
0x2b2b   :  { %v3939_v36 = vpop.eup %3938 }
0x2b2c   :  { %2841 = vrot.lane.b32.xlu1 %v3939_v36, %s4139_s19 }
0x2b9e   :  { %v2842_v37 = vpop.permute.xlu1 %2841 }
0x2b9f   :  { %v2844_v38 = vmul.f32 %v3937_v29, %v2842_v37 }
0x2ba1   :  { %2846 = vrot.lane.b32.xlu0 %v2844_v38, %s4140_s3 }
0x2c13   :  { %v2847_v40 = vpop.permute.xlu0 %2846 }
0x2c14   :  { %3682 = vmatmul.mubr.msk.f32.vlgmr.msra.gmra.mrb[44].mxu0 %vm93_vm4, %v2847_v40 }
0x2c15   :  { %3685 = vmatpush3.msk.msra.mxu0 %vm4279_vm1, %v4138_v6  ;;  %3686 = vmatprep.mubr.msk.f32.mxu0 %vm4136_vm0, %v4135_v1 }
0x2c16   :  { %3689 = vmatprep.subr.mxu0 %v4135_v1 }
0x2ce7   :  { %v2916_v41 = vpop.f32.mrb[44].mxu0 }
0x2ce8   :  { %v2917_v42 = vadd.f32 %v3940_v13, %v2916_v41  ;;  %v3683_v43 = vpop.f32.mrb[45].mxu0 }
0x2cea   :  { %3093 = vst.msk [vmem:[#allocation12] sm:$0x1] %vm480_vm6, %v2917_v42  ;;  %2931 = vperm.xlu0 %3875, %v2917_v42   ;;  %2922 = vperm.xlu1 %3874, %v2917_v42  }
0x2cee   :  { %632 = vrot.lane.b32.xlu0 %v4373_v0, %s4143_s1  ;;  %2935 = vrot.lane.b32.xlu1 %v2917_v42, %s4140_s3 }
0x2cf2   :  { %1334 = vrot.lane.b32.xlu0 %v4497_v39, %s4143_s1  ;;  %3095 = vrot.lane.b32.xlu1 %v2838_v35, %s4143_s1 }
0x2cf6   :  { %2036 = vrot.lane.b32.xlu0 %v4617_v8, %s4143_s1  ;;  %983 = vrot.lane.b32.xlu1 %v4437_v49, %s4143_s1 }
0x2cfa   :  { %2738 = vrot.lane.b32.xlu0 %v4736_v56, %s4143_s1  ;;  %1685 = vrot.lane.b32.xlu1 %v4557_v30, %s4143_s1 }
0x2cfe   :  { %2387 = vrot.lane.b32.xlu1 %v4677_v12, %s4143_s1 }
0x2d02   :  { %3089 = vrot.lane.b32.xlu1 %v2917_v42, %s4143_s1 }
0x2d69   :  { %v2932_v5 = vpop.permute.xlu0 %2931  ;;  %v2923_v6 = vpop.permute.xlu1 %2922 }
0x2d6a   :  { %v2925_v0 = vsub.f32 %v2923_v6, %v4757_v61 }
0x2d6c   :  { %v2926_v18 = vmax.f32 %v2925_v0, 0.0 }
0x2d6d   :  { %v633_v44 = vpop.permute.xlu0 %632  ;;  %v2936_v45 = vpop.permute.xlu1 %2935 }
0x2d6e   :  { %v2927_v39 = vsub.f32 %v4750_v10, %v2926_v18  ;;  %635 = vst.msk [vmem:[#allocation11] sm:$0x1] %vm480_vm6, %v633_v44  ;;  %2938 = vst.msk [vmem:[#allocation14 + $0x7] sm:$0x1] %vm480_vm6, %v2936_v45 }
0x2d70   :  { %v2928_v49 = vmax.f32 %v2927_v39, 0.0 }
0x2d71   :  { %v1335_v30 = vpop.permute.xlu0 %1334  ;;  %v3096_v8 = vpop.permute.xlu1 %3095 }
0x2d72   :  { %1337 = vst.msk [vmem:[#allocation11 + $0x2] sm:$0x1] %vm480_vm6, %v1335_v30  ;;  %3098 = vst.msk [vmem:[#allocation12 + $0x1] sm:$0x1] %vm480_vm6, %v3096_v8  ;;  %v2934_v12 = vsel %vm2929_vm14, %v2932_v5, %v2928_v49 }
0x2d73   :  { %3687 = vmatmul.mubr.msk.f32.vlgmr.msra.gmra.mrb[46].mxu0 %vm204_vm2, %v2934_v12  ;;  %3101 = vst.msk [vmem:[#allocation15] sm:$0x1] %vm3100_vm15, %v2934_v12 }
0x2d74   :  { %3691 = vmatprep.mubr.msk.f32.mxu0 %vm4136_vm0, %v4135_v1 }
0x2d75   :  { %v2037_v22 = vpop.permute.xlu0 %2036  ;;  %v984_v25 = vpop.permute.xlu1 %983  ;;  %v3015_v46 = vld [vmem:[#allocation14] sm:$0xff] }
0x2d76   :  { %2039 = vst.msk [vmem:[#allocation11 + $0x4] sm:$0x1] %vm480_vm6, %v2037_v22  ;;  %986 = vst.msk [vmem:[#allocation11 + $0x1] sm:$0x1] %vm480_vm6, %v984_v25  ;;  %3690 = vmatpush3.msra.mxu0 %v3015_v46 }
0x2d79   :  { %v2739_v3 = vpop.permute.xlu0 %2738  ;;  %v1686_v47 = vpop.permute.xlu1 %1685 }
0x2d7a   :  { %2741 = vst.msk [vmem:[#allocation11 + $0x6] sm:$0x1] %vm480_vm6, %v2739_v3  ;;  %1688 = vst.msk [vmem:[#allocation11 + $0x3] sm:$0x1] %vm480_vm6, %v1686_v47 }
0x2d7d   :  { %v2388_v48 = vpop.permute.xlu1 %2387 }
0x2d7e   :  { %2390 = vst.msk [vmem:[#allocation11 + $0x5] sm:$0x1] %vm480_vm6, %v2388_v48 }
0x2d81   :  { %v3090_v50 = vpop.permute.xlu1 %3089 }
0x2d82   :  { %3092 = vst.msk [vmem:[#allocation11 + $0x7] sm:$0x1] %vm480_vm6, %v3090_v50 }
0x2e46   :  { %v3008_v1 = vpop.f32.mrb[46].mxu0 }
0x2e47   :  { %v3012_v51 = vsub.f32 1.0, %v3008_v1  ;;  %v3688_v52 = vpop.f32.mrb[47].mxu0 }
0x2e49   :  { %v3013_v54 = vmax.f32 %v3012_v51, 0.0 }
0x2e4b   :  { %v3014_v56 = vmin.f32 %v2934_v12, %v3013_v54 }
0x2e4d   :  { %3692 = vmatmul.mubr.msk.f32.vlgmr.msra.gmra.mrb[48].mxu0 %vm204_vm2, %v3014_v56 }
0x2e4e   :  { %4040 = shalt.err (!%p4037_p8)
}
0x2e4f   :  { %s4041_s16 = scalar_lea.hbm %s4869_s9, 128 }
0x2e50   :  { %p4042_p9 = scmp.ne.s32.totalorder %s4869_s9, %s4041_s16  ;;  %p4045_p10 = scmp.lt.u32.totalorder %s4041_s16, %s4869_s9 }
0x2e52   :  { %p4047_p11 = pnand %p4045_p10, %p4042_p9 }
0x2e54   :  { %4050 = shalt.err (!%p4047_p11)
}
0x2e55   :  { %3111 = dma.vmem_to_hbm [thread:$0]  %s3109_s22, 128, %s4869_s9, [#allocation5]  }
0x2e56   :  { %s4145_s19 = smov [#allocation15]  }
0x2e57   :  { %s3138_s8 = sshll.u32 %s4145_s19, 4  ;;  %s3139_s8 = int_to_ptr.vmem [resolvable:$true] %s3138_s8 }
0x2e58   :  { %s4051_s21 = scalar_lea.vmem %s3139_s8, 16  ;;  %s4055_s23 = scalar_lea.vmem %s3139_s8, 32 }
0x2e59   :  { %p4052_p12 = scmp.ne.s32.totalorder %s3139_s8, %s4051_s21  ;;  %p4056_p13 = scmp.lt.s32.totalorder %s3139_s8, %s3139_s8 }
0x2e5a   :  { %p4057_p0 = scmp.lt.s32.totalorder %s4055_s23, %s4051_s21 }
0x2e5c   :  { %p4058_p1 = por %p4057_p0, %p4056_p13 }
0x2e5e   :  { %p4059_p2 = pnand %p4058_p1, %p4052_p12 }
0x2e60   :  { %4062 = shalt.err (!%p4059_p2)
}
0x2e61   :  { %s4063_s0 = scalar_lea.hbm %s4872_s12, 16 }
0x2e62   :  { %p4064_p3 = scmp.ne.s32.totalorder %s4872_s12, %s4063_s0  ;;  %p4067_p4 = scmp.lt.u32.totalorder %s4063_s0, %s4872_s12 }
0x2e64   :  { %p4069_p5 = pnand %p4067_p4, %p4064_p3 }
0x2e66   :  { %4072 = shalt.err (!%p4069_p5)
}
0x2e67   :  { %3141 = dma.vmem_to_hbm [thread:$0]  %s3139_s8, 16, %s4872_s12, [#allocation16]  }
0x2e68   :  { %s4146_s7 = smov [#allocation12]   ;;  %s4147_s1 = smov [#allocation14]  }
0x2e69   :  { %s3118_s28 = sshll.u32 %s4146_s7, 4  ;;  %s3128_s5 = sshll.u32 %s4147_s1, 4  ;;  %s3119_s28 = int_to_ptr.vmem [resolvable:$true] %s3118_s28  ;;  %s3129_s5 = int_to_ptr.vmem [resolvable:$true] %s3128_s5 }
0x2e6a   :  { %s4073_s22 = scalar_lea.vmem %s3119_s28, 64  ;;  %p4078_p7 = scmp.lt.s32.totalorder %s3119_s28, %s3119_s28 }
0x2e6b   :  { %p4074_p6 = scmp.ne.s32.totalorder %s3119_s28, %s4073_s22  ;;  %p4079_p8 = scmp.lt.s32.totalorder %s4073_s22, %s4073_s22 }
0x2e6d   :  { %p4080_p9 = por %p4079_p8, %p4078_p7 }
0x2e6f   :  { %p4081_p10 = pnand %p4080_p9, %p4074_p6 }
0x2f20   :  { %v3085_v57 = vpop.f32.mrb[48].mxu0 }
0x2f21   :  { %3099 = vst.msk [vmem:[#allocation12 + $0x2] sm:$0x1] %vm480_vm6, %v3085_v57  ;;  %v3693_v58 = vpop.f32.mrb[49].mxu0 }
0x2f22   :  { %4084 = shalt.err (!%p4081_p10)
}
0x2f23   :  { %s4085_s12 = scalar_lea.hbm %s4870_s10, 64 }
0x2f24   :  { %p4086_p11 = scmp.ne.s32.totalorder %s4870_s10, %s4085_s12  ;;  %p4089_p12 = scmp.lt.u32.totalorder %s4085_s12, %s4870_s10 }
0x2f26   :  { %p4091_p13 = pnand %p4089_p12, %p4086_p11 }
0x2f28   :  { %4094 = shalt.err (!%p4091_p13)
}
0x2f29   :  { %3121 = dma.vmem_to_hbm [thread:$0]  %s3119_s28, 64, %s4870_s10, [#allocation13]  }
0x2f2a   :  { %s4095_s14 = scalar_lea.vmem %s3129_s5, 128  ;;  %p4100_p1 = scmp.lt.s32.totalorder %s3129_s5, %s3129_s5 }
0x2f2b   :  { %p4096_p0 = scmp.ne.s32.totalorder %s3129_s5, %s4095_s14  ;;  %p4101_p2 = scmp.lt.s32.totalorder %s4095_s14, %s4095_s14 }
0x2f2d   :  { %p4102_p3 = por %p4101_p2, %p4100_p1 }
0x2f2f   :  { %p4103_p4 = pnand %p4102_p3, %p4096_p0 }
0x2f31   :  { %4106 = shalt.err (!%p4103_p4)
}
0x2f32   :  { %s4107_s8 = scalar_lea.hbm %s4871_s11, 128 }
0x2f33   :  { %p4108_p5 = scmp.ne.s32.totalorder %s4871_s11, %s4107_s8  ;;  %p4111_p6 = scmp.lt.u32.totalorder %s4107_s8, %s4871_s11 }
0x2f35   :  { %p4113_p7 = pnand %p4111_p6, %p4108_p5 }
0x2f37   :  { %4116 = shalt.err (!%p4113_p7)
}
0x2f38   :  { %3131 = dma.vmem_to_hbm [thread:$0]  %s3129_s5, 128, %s4871_s11, [#allocation13]  }
0x2f39   :  { %4123 = dma.done.wait [#allocation5], 128  }
0x2f3a   :  { %4124 = vsyncadd [#allocation5], 4294967168 }
0x2f3b   :  { %4125 = dma.done.wait [#allocation13], 192  }
0x2f3c   :  { %4126 = vsyncadd [#allocation13], 4294967104 }
0x2f3d   :  { %4127 = dma.done.wait [#allocation16], 16  }
0x2f3e   :  { %4128 = vsyncadd [#allocation16], 4294967280 }
0x2f3f   :  { %3154 = vsyncpa [#allocation4], 1 }
0x2f40   :  { %3155 = vsyncpa [#allocation7], 1 }
0x2f41   :  { %3156 = vsyncpa [#allocation10], 1 }
0x2f42   :  { %3157 = vsyncpa [#allocation5], 1 }
0x2f43   :  { %3158 = vsyncpa [#allocation13], 1 }
0x2f44   :  { %3159 = vsyncpa [#allocation16], 1 }

</bundles_post_ra>
